<compile_context>
chip_gen: v5e
topology: v5e:2x2
jax: 0.10.0
libtpu: 0.0.40
codegen_flags: <defaults>
</compile_context>

<pallas_src>
import functools

import jax
import jax.numpy as jnp
from jax import lax
from jax.experimental import pallas as pl
from jax.experimental.pallas import tpu as pltpu


def _ce_isogclr_kernel(logits_ref, labels_ref, tlabels_ref, u_ref, gamma_ref,
                       out_ref, m_sc, l_sc, lab_sc, lp_sc, *,
                       tasks_per_tile, items, num_pos, num_neg, tau, alpha,
                       eps, inv_b, inv_mp, lane):
    """Grid = (row tile, C tile); the C axis is innermost ("arbitrary")."""
    ci = pl.program_id(1)
    rows, c_blk = logits_ref.shape
    n_slabs = c_blk // lane

    # ---- reset per-row-tile running accumulators at the start of the C loop ----
    @pl.when(ci == 0)
    def _init():
        m_sc[...] = jnp.full((rows, lane), -jnp.inf, jnp.float32)
        l_sc[...] = jnp.zeros((rows, lane), jnp.float32)
        lab_sc[...] = jnp.zeros((rows, lane), jnp.float32)
        lp_sc[...] = jnp.zeros((rows, lane), jnp.float32)

    # Per-slab gather masks from a per-tile "distance" tensor, so the inner loop
    # only compares against a compile-time constant:
    #   global column of (row, slab s, lane j) == label  <=>  label - base - j == s*lane
    base = ci * c_blk
    col = lax.broadcasted_iota(jnp.int32, (rows, lane), 1)
    lab_d = (labels_ref[...] - base) - col          # (rows, lane) int32
    lp_d = (tlabels_ref[...] - base) - col          # (rows, lane) int32

    # ---- pass 1: per-lane max of this tile (VPU only, no XLU in the hot loop) ----
    m_prev = m_sc[...]
    tile_max = logits_ref[:, 0:lane].astype(jnp.float32)
    for s in range(1, n_slabs):
        tile_max = jnp.maximum(
            tile_max, logits_ref[:, s * lane:(s + 1) * lane].astype(jnp.float32))
    m_new = jnp.maximum(m_prev, tile_max)

    # ---- pass 2: per-lane online exp-sum + masked gathers (~1 exp / element) ----
    l_acc = l_sc[...] * jnp.exp(m_prev - m_new)     # first tile: exp(-inf) = 0
    lab_acc = lab_sc[...]
    lp_acc = lp_sc[...]
    for s in range(n_slabs):
        slab = logits_ref[:, s * lane:(s + 1) * lane].astype(jnp.float32)
        l_acc = l_acc + jnp.exp(slab - m_new)
        off = s * lane
        lab_acc = lab_acc + jnp.where(lab_d == off, slab, 0.0)
        lp_acc = lp_acc + jnp.where(lp_d == off, slab, 0.0)

    m_sc[...] = m_new
    l_sc[...] = l_acc
    lab_sc[...] = lab_acc
    lp_sc[...] = lp_acc

    # ---- finalize once per row tile, after the last C tile -----------------------
    @pl.when(ci == pl.num_programs(1) - 1)
    def _finalize():
        # single cross-lane reduction per row tile
        m_vec = m_sc[...]
        m_row = jnp.max(m_vec, axis=1, keepdims=True)                     # (rows, 1)
        l_row = jnp.sum(l_sc[...] * jnp.exp(m_vec - m_row), axis=1, keepdims=True)
        lab_row = jnp.sum(lab_sc[...], axis=1, keepdims=True)             # label logit
        lp_row = jnp.sum(lp_sc[...], axis=1, keepdims=True)               # task-label logit

        # cross-entropy partial: nll = logsumexp - label_logit, scaled by 1/B
        nll = m_row + jnp.log(l_row) - lab_row
        ce_part = jnp.sum(nll, axis=0, keepdims=True) * inv_b             # (1, 1)

        # iSogCLR term per task (block-diagonal), factored to column ops and
        # centered by the max negative logit c:
        #   exp((Ln-Lp)/tau) = e_n * f_p,  e_n = exp((Ln-c)/tau),  f_p = exp((c-Lp)/tau)
        #   sum_n exp(.)          = f_p * s1,                s1  = sum_n e_n
        #   sum_n exp(.) * (Ln-Lp) = f_p * (s2c - (Lp-c)*s1), s2c = sum_n e_n*(Ln-c)
        # NOTE: f_p has the same overflow envelope as the reference's exp(diff/tau).
        u_col = u_ref[...]                                                # (rows, 1)
        g = gamma_ref[...]                                                # (1, 1)
        row_in_task = lax.broadcasted_iota(jnp.int32, (items, 1), 0)
        neg_mask = row_in_task >= num_pos
        pos_mask = row_in_task < num_pos
        inv_tau = 1.0 / tau
        inv_nneg = 1.0 / num_neg

        iso_acc = jnp.zeros((1, 1), jnp.float32)
        for t in range(tasks_per_tile):                                   # unrolled
            r0 = t * items
            lp_t = lp_row[r0:r0 + items, :]                               # (items, 1)
            u_t = u_col[r0:r0 + items, :]
            c = jnp.max(jnp.where(neg_mask, lp_t, -jnp.inf), axis=0, keepdims=True)
            lp_c = lp_t - c                                               # centered
            e_n = jnp.where(neg_mask, jnp.exp(lp_c * inv_tau), 0.0)
            s1 = jnp.sum(e_n, axis=0, keepdims=True)
            s2c = jnp.sum(e_n * lp_c, axis=0, keepdims=True)
            f_p = jnp.exp(-lp_c * inv_tau)
            mean_exp = f_p * (s1 * inv_nneg)          # mean_n exp(diff/tau), per row
            u_hat = (1.0 - g) * u_t + g * (mean_exp + eps)
            row_loss = f_p * (s2c - lp_c * s1) * inv_nneg / u_hat
            iso_acc = iso_acc + jnp.sum(jnp.where(pos_mask, row_loss, 0.0),
                                        axis=0, keepdims=True)

        part = ce_part + alpha * (iso_acc * inv_mp)                       # (1, 1)
        out_ref[...] = jnp.broadcast_to(part, out_ref.shape)              # lane-dense


def ce_isogclr_loss(logits, labels, index, u, *, multi_task, num_pos,
                    tau=1.0, alpha=1.0, eps=1e-6, gamma=0.9,
                    c_block=None, tasks_per_tile=None):
    """Forward pass of CE_iSogCLR_Loss (enable_isogclr=False path)."""
    B, C = logits.shape
    assert B % multi_task == 0, (B, multi_task)
    items = B // multi_task
    num_neg = items - num_pos
    assert 0 < num_pos < items, (num_pos, items)

    itemsize = jnp.dtype(logits.dtype).itemsize
    sublane = {4: 8, 2: 16, 1: 32}[itemsize]
    assert items % sublane == 0, (items, sublane)

    LANE = 128
    TILE_BUDGET = 8 * 1024 * 1024        # bytes per logits tile (Pallas double-buffers it)
    MAX_C_BLOCK = 8192                   # bounds the unrolled per-slab loop
    MAX_TASKS_PER_TILE = 64              # bounds the unrolled finalize loop
    VMEM_LIMIT = 48 * 1024 * 1024        # <= v7x's 64 MiB/TC physical VMEM

    # ---- class (lane) tiling: largest multiple-of-128 divisor of C in budget ----
    if c_block is None:
        if C <= LANE:
            c_block = C
        else:
            # TODO(synk): ragged class counts (C > 128 and C % 128 != 0) would need a
            # lane-masked tail slab; not implemented.
            assert C % LANE == 0, C
            cap = (TILE_BUDGET // (items * itemsize)) // LANE * LANE
            cap = max(LANE, min(C, cap, MAX_C_BLOCK))
            c_block = LANE
            for cand in range(cap, LANE - 1, -LANE):
                if C % cand == 0:
                    c_block = cand
                    break
    lane = min(LANE, c_block)
    assert C % c_block == 0 and c_block % lane == 0, (C, c_block, lane)
    num_c_tiles = C // c_block

    # ---- row (sublane) tiling: pack several tasks per row tile -------------------
    if tasks_per_tile is None:
        tasks_per_tile = 1
        for t in range(1, min(multi_task, MAX_TASKS_PER_TILE) + 1):
            if multi_task % t:
                continue
            if multi_task > 1 and multi_task // t < 2:
                continue        # keep >= 2 row tiles so both v7x TensorCores get work
            if t * items * c_block * itemsize > TILE_BUDGET:
                continue
            tasks_per_tile = t
    assert multi_task % tasks_per_tile == 0, (multi_task, tasks_per_tile)
    rows = tasks_per_tile * items
    num_row_tiles = multi_task // tasks_per_tile
    # TODO(synk): with multi_task == 1 there is a single row tile, so one v7x
    # TensorCore idles; a cross-core split of the C axis would need a merge pass.

    # ---- VMEM guard (review): double-buffered logits tile + scratch must fit ----
    tile_bytes = rows * c_block * itemsize
    scratch_bytes = 4 * rows * lane * 4
    assert 2 * tile_bytes + scratch_bytes <= VMEM_LIMIT - 4 * 1024 * 1024, (
        "tile exceeds the VMEM budget", tile_bytes, scratch_bytes)

    # ---- O(B) glue (gathers / scalar switch); all O(B*C) work stays in-kernel ----
    labels_col = labels.astype(jnp.int32).reshape(B, 1)   # NOTE: assumes labels in [0, C)
    task_labels = jnp.repeat(
        labels.astype(jnp.int32).reshape(multi_task, items)[:, 0], items).reshape(B, 1)
    u_b = u[index].reshape(B, 1).astype(jnp.float32)
    index_pos = index.reshape(multi_task, items)[:, :num_pos].reshape(-1)
    gamma_eff = jnp.where(jnp.sum(u[index_pos]) == 0.0, 1.0, gamma)
    gamma_eff = gamma_eff.astype(jnp.float32).reshape(1, 1)

    kernel = functools.partial(
        _ce_isogclr_kernel, tasks_per_tile=tasks_per_tile, items=items,
        num_pos=num_pos, num_neg=num_neg, tau=float(tau), alpha=float(alpha),
        eps=float(eps), inv_b=1.0 / B, inv_mp=1.0 / (multi_task * num_pos), lane=lane)

    out = pl.pallas_call(
        kernel,
        out_shape=jax.ShapeDtypeStruct((num_row_tiles * 8, 128), jnp.float32),
        grid_spec=pltpu.PrefetchScalarGridSpec(
            num_scalar_prefetch=0,
            grid=(num_row_tiles, num_c_tiles),                 # C innermost (reduction)
            in_specs=[
                pl.BlockSpec((rows, c_block), lambda r, c: (r, c)),   # logits (native dtype)
                pl.BlockSpec((rows, 1), lambda r, c: (r, 0)),          # labels
                pl.BlockSpec((rows, 1), lambda r, c: (r, 0)),          # task labels
                pl.BlockSpec((rows, 1), lambda r, c: (r, 0)),          # u[index]
                pl.BlockSpec((1, 1), lambda r, c: (0, 0)),             # gamma switch
            ],
            out_specs=pl.BlockSpec((8, 128), lambda r, c: (r, 0)),
            scratch_shapes=[pltpu.VMEM((rows, lane), jnp.float32)] * 4,  # m, l, lab, lp
        ),
        compiler_params=pltpu.CompilerParams(
            dimension_semantics=("parallel", "arbitrary"),     # row tiles across TCs
            vmem_limit_bytes=VMEM_LIMIT),
        cost_estimate=pl.CostEstimate(
            flops=int(10 * B * C + 64 * B),
            transcendentals=int(B * C + 8 * B),
            bytes_accessed=int(B * C * itemsize + 24 * B)),
    )(logits, labels_col, task_labels, u_b, gamma_eff)

    # each row tile wrote its (ce + alpha*iso) partial to one (8, 128) block
    return jnp.sum(out[0::8, 0])


def ce_isogclr_loss_ref(logits, labels, index, u, *, multi_task, num_pos,
                        tau=1.0, alpha=1.0, eps=1e-6, gamma=0.9):
    """Pure-JAX reference following the PyTorch forward line by line."""
    B, C = logits.shape
    items = B // multi_task
    log_probs = jax.nn.log_softmax(logits, axis=1)
    ce = -jnp.mean(log_probs[jnp.arange(B), labels])
    task_labels = jnp.repeat(labels.reshape(multi_task, items)[:, 0], items)
    lp = logits[jnp.arange(B), task_labels].reshape(multi_task, items)
    pos = lp[:, :num_pos]
    neg = lp[:, num_pos:]
    diff = (neg[:, None, :] - pos[:, :, None]).reshape(multi_task * num_pos, items - num_pos)
    exp_d = jnp.exp(diff / tau)
    index_pos = index.reshape(multi_task, items)[:, :num_pos].reshape(-1)
    u_pos = u[index_pos]
    g = jnp.where(jnp.sum(u_pos) == 0.0, 1.0, gamma)
    uu = (1.0 - g) * u_pos + g * (jnp.mean(exp_d, axis=1, keepdims=True) + eps)
    w = exp_d / uu
    iso = jnp.mean(jnp.mean(w * diff, axis=1, keepdims=True))
    return ce + alpha * iso


if __name__ == "__main__":
    key = jax.random.PRNGKey(0)
    multi_task, num_pos, items = 4, 4, 16
    B = multi_task * items           # 64 items in the batch
    C = 1024                         # number of classes
    N = 256                          # size of the `u` buffer (module default 100000)

    k1, k2, k3, k4 = jax.random.split(key, 4)
    logits = jax.random.normal(k1, (B, C), dtype=jnp.float32)
    labels = jax.random.randint(k2, (B,), 0, C, dtype=jnp.int32)
    index = jax.random.permutation(k3, N)[:B].astype(jnp.int32)
    u_zero = jnp.zeros((N, 1), jnp.float32)                 # fresh self.u -> gamma := 1.0
    u_warm = jax.random.uniform(k4, (N, 1), jnp.float32)    # warm self.u -> gamma = 0.9

    ref = ce_isogclr_loss_ref(logits, labels, index, u_zero,
                              multi_task=multi_task, num_pos=num_pos)

    # 1) heuristic tiling (2 tasks per row tile, single C tile)
    out = jax.block_until_ready(
        ce_isogclr_loss(logits, labels, index, u_zero,
                        multi_task=multi_task, num_pos=num_pos))
    assert jnp.allclose(out, ref, rtol=1e-4, atol=1e-4), (out, ref)

    # 2) forced small tiles: exercises the online C accumulation and 4 row tiles
    out2 = jax.block_until_ready(
        ce_isogclr_loss(logits, labels, index, u_zero,
                        multi_task=multi_task, num_pos=num_pos,
                        c_block=256, tasks_per_tile=1))
    assert jnp.allclose(out2, ref, rtol=1e-4, atol=1e-4), (out2, ref)

    # 3) warm `u` buffer (gamma = 0.9 path)
    ref3 = ce_isogclr_loss_ref(logits, labels, index, u_warm,
                               multi_task=multi_task, num_pos=num_pos)
    out3 = jax.block_until_ready(
        ce_isogclr_loss(logits, labels, index, u_warm,
                        multi_task=multi_task, num_pos=num_pos))
    assert jnp.allclose(out3, ref3, rtol=1e-4, atol=1e-4), (out3, ref3)

    # 4) bf16 logits stream (kernel upcasts per slab after load)
    logits_bf16 = logits.astype(jnp.bfloat16)
    ref4 = ce_isogclr_loss_ref(logits_bf16.astype(jnp.float32), labels, index, u_zero,
                               multi_task=multi_task, num_pos=num_pos)
    out4 = jax.block_until_ready(
        ce_isogclr_loss(logits_bf16, labels, index, u_zero,
                        multi_task=multi_task, num_pos=num_pos))
    assert jnp.allclose(out4, ref4, rtol=1e-3, atol=1e-3), (out4, ref4)

    print("KERNEL_OK")
</pallas_src>

<mosaic_0001>
module attributes {stable_mosaic.version = 11 : i64} {
  func.func @_ce_isogclr_kernel(%arg0: i32, %arg1: i32, %arg2: memref<32x1024xf32, #tpu.memory_space<vmem>>, %arg3: memref<32x1xi32, #tpu.memory_space<vmem>>, %arg4: memref<32x1xi32, #tpu.memory_space<vmem>>, %arg5: memref<32x1xf32, #tpu.memory_space<vmem>>, %arg6: memref<1x1xf32, #tpu.memory_space<vmem>>, %arg7: memref<8x128xf32, #tpu.memory_space<vmem>>, %arg8: memref<32x128xf32, #tpu.memory_space<vmem>>, %arg9: memref<32x128xf32, #tpu.memory_space<vmem>>, %arg10: memref<32x128xf32, #tpu.memory_space<vmem>>, %arg11: memref<32x128xf32, #tpu.memory_space<vmem>>) attributes {dimension_semantics = [#tpu.dimension_semantics<parallel>, #tpu.dimension_semantics<arbitrary>], iteration_bounds = array<i64: 2, 1>, scalar_prefetch = 0 : i64, scratch_operands = 4 : i64, tpu.core_type = #tpu.core_type<tc>, window_params = [{transform_indices = @transform_0, window_bounds = array<i64: 32, 1024>}, {transform_indices = @transform_1, window_bounds = array<i64: 32, 1>}, {transform_indices = @transform_2, window_bounds = array<i64: 32, 1>}, {transform_indices = @transform_3, window_bounds = array<i64: 32, 1>}, {pipeline_mode = #tpu.pipeline_mode<synchronous>, transform_indices = @transform_4, window_bounds = array<i64: 1, 1>}, {transform_indices = @transform_5, window_bounds = array<i64: 8, 128>}]} {
    %c0_i32 = arith.constant 0 : i32
    %0 = arith.cmpi eq, %arg1, %c0_i32 : i32
    %1 = arith.extui %0 : i1 to i32
    %c0_i32_0 = arith.constant 0 : i32
    %2 = arith.cmpi ne, %1, %c0_i32_0 : i32
    scf.if %2 {
      %cst_71 = arith.constant 0xFF800000 : f32
      %157 = vector.broadcast %cst_71 : f32 to vector<32x128xf32>
      %c0_72 = arith.constant 0 : index
      %c0_73 = arith.constant 0 : index
      %158 = vector.load %arg8[%c0_72, %c0_73] : memref<32x128xf32, #tpu.memory_space<vmem>>, vector<32x128xf32>
      tpu.vector_store %arg8[%c0_72, %c0_73], %157 {strides = array<i32>} : memref<32x128xf32, #tpu.memory_space<vmem>>, vector<32x128xf32>,
      %cst_74 = arith.constant 0.000000e+00 : f32
      %159 = vector.broadcast %cst_74 : f32 to vector<32x128xf32>
      %c0_75 = arith.constant 0 : index
      %c0_76 = arith.constant 0 : index
      %160 = vector.load %arg9[%c0_75, %c0_76] : memref<32x128xf32, #tpu.memory_space<vmem>>, vector<32x128xf32>
      tpu.vector_store %arg9[%c0_75, %c0_76], %159 {strides = array<i32>} : memref<32x128xf32, #tpu.memory_space<vmem>>, vector<32x128xf32>,
      %cst_77 = arith.constant 0.000000e+00 : f32
      %161 = vector.broadcast %cst_77 : f32 to vector<32x128xf32>
      %c0_78 = arith.constant 0 : index
      %c0_79 = arith.constant 0 : index
      %162 = vector.load %arg10[%c0_78, %c0_79] : memref<32x128xf32, #tpu.memory_space<vmem>>, vector<32x128xf32>
      tpu.vector_store %arg10[%c0_78, %c0_79], %161 {strides = array<i32>} : memref<32x128xf32, #tpu.memory_space<vmem>>, vector<32x128xf32>,
      %cst_80 = arith.constant 0.000000e+00 : f32
      %163 = vector.broadcast %cst_80 : f32 to vector<32x128xf32>
      %c0_81 = arith.constant 0 : index
      %c0_82 = arith.constant 0 : index
      %164 = vector.load %arg11[%c0_81, %c0_82] : memref<32x128xf32, #tpu.memory_space<vmem>>, vector<32x128xf32>
      tpu.vector_store %arg11[%c0_81, %c0_82], %163 {strides = array<i32>} : memref<32x128xf32, #tpu.memory_space<vmem>>, vector<32x128xf32>,
    } else {
    }
    %c1024_i32 = arith.constant 1024 : i32
    %3 = arith.muli %arg1, %c1024_i32 : i32
    %4 = tpu.iota {dimensions = array<i32: 1>} : vector<32x128xi32>
    %c0 = arith.constant 0 : index
    %c0_1 = arith.constant 0 : index
    %5 = vector.load %arg3[%c0, %c0_1] : memref<32x1xi32, #tpu.memory_space<vmem>>, vector<32x1xi32>
    %6 = vector.broadcast %3 : i32 to vector<32x1xi32>
    %7 = arith.subi %5, %6 : vector<32x1xi32>
    %8 = vector.broadcast %7 : vector<32x1xi32> to vector<32x128xi32>
    %9 = arith.subi %8, %4 : vector<32x128xi32>
    %c0_2 = arith.constant 0 : index
    %c0_3 = arith.constant 0 : index
    %10 = vector.load %arg4[%c0_2, %c0_3] : memref<32x1xi32, #tpu.memory_space<vmem>>, vector<32x1xi32>
    %11 = vector.broadcast %3 : i32 to vector<32x1xi32>
    %12 = arith.subi %10, %11 : vector<32x1xi32>
    %13 = vector.broadcast %12 : vector<32x1xi32> to vector<32x128xi32>
    %14 = arith.subi %13, %4 : vector<32x128xi32>
    %c0_4 = arith.constant 0 : index
    %c0_5 = arith.constant 0 : index
    %15 = vector.load %arg8[%c0_4, %c0_5] : memref<32x128xf32, #tpu.memory_space<vmem>>, vector<32x128xf32>
    %c0_6 = arith.constant 0 : index
    %c0_7 = arith.constant 0 : index
    %16 = vector.load %arg2[%c0_6, %c0_7] : memref<32x1024xf32, #tpu.memory_space<vmem>>, vector<32x128xf32>
    %c0_8 = arith.constant 0 : index
    %c128 = arith.constant 128 : index
    %17 = vector.load %arg2[%c0_8, %c128] : memref<32x1024xf32, #tpu.memory_space<vmem>>, vector<32x128xf32>
    %18 = arith.maximumf %16, %17 : vector<32x128xf32>
    %c0_9 = arith.constant 0 : index
    %c256 = arith.constant 256 : index
    %19 = vector.load %arg2[%c0_9, %c256] : memref<32x1024xf32, #tpu.memory_space<vmem>>, vector<32x128xf32>
    %20 = arith.maximumf %18, %19 : vector<32x128xf32>
    %c0_10 = arith.constant 0 : index
    %c384 = arith.constant 384 : index
    %21 = vector.load %arg2[%c0_10, %c384] : memref<32x1024xf32, #tpu.memory_space<vmem>>, vector<32x128xf32>
    %22 = arith.maximumf %20, %21 : vector<32x128xf32>
    %c0_11 = arith.constant 0 : index
    %c512 = arith.constant 512 : index
    %23 = vector.load %arg2[%c0_11, %c512] : memref<32x1024xf32, #tpu.memory_space<vmem>>, vector<32x128xf32>
    %24 = arith.maximumf %22, %23 : vector<32x128xf32>
    %c0_12 = arith.constant 0 : index
    %c640 = arith.constant 640 : index
    %25 = vector.load %arg2[%c0_12, %c640] : memref<32x1024xf32, #tpu.memory_space<vmem>>, vector<32x128xf32>
    %26 = arith.maximumf %24, %25 : vector<32x128xf32>
    %c0_13 = arith.constant 0 : index
    %c768 = arith.constant 768 : index
    %27 = vector.load %arg2[%c0_13, %c768] : memref<32x1024xf32, #tpu.memory_space<vmem>>, vector<32x128xf32>
    %28 = arith.maximumf %26, %27 : vector<32x128xf32>
    %c0_14 = arith.constant 0 : index
    %c896 = arith.constant 896 : index
    %29 = vector.load %arg2[%c0_14, %c896] : memref<32x1024xf32, #tpu.memory_space<vmem>>, vector<32x128xf32>
    %30 = arith.maximumf %28, %29 : vector<32x128xf32>
    %31 = arith.maximumf %15, %30 : vector<32x128xf32>
    %c0_15 = arith.constant 0 : index
    %c0_16 = arith.constant 0 : index
    %32 = vector.load %arg9[%c0_15, %c0_16] : memref<32x128xf32, #tpu.memory_space<vmem>>, vector<32x128xf32>
    %33 = arith.subf %15, %31 : vector<32x128xf32>
    %34 = math.exp %33 : vector<32x128xf32>
    %35 = arith.mulf %32, %34 : vector<32x128xf32>
    %c0_17 = arith.constant 0 : index
    %c0_18 = arith.constant 0 : index
    %36 = vector.load %arg10[%c0_17, %c0_18] : memref<32x128xf32, #tpu.memory_space<vmem>>, vector<32x128xf32>
    %c0_19 = arith.constant 0 : index
    %c0_20 = arith.constant 0 : index
    %37 = vector.load %arg11[%c0_19, %c0_20] : memref<32x128xf32, #tpu.memory_space<vmem>>, vector<32x128xf32>
    %c0_21 = arith.constant 0 : index
    %c0_22 = arith.constant 0 : index
    %38 = vector.load %arg2[%c0_21, %c0_22] : memref<32x1024xf32, #tpu.memory_space<vmem>>, vector<32x128xf32>
    %39 = arith.subf %38, %31 : vector<32x128xf32>
    %40 = math.exp %39 : vector<32x128xf32>
    %41 = arith.addf %35, %40 : vector<32x128xf32>
    %c0_i32_23 = arith.constant 0 : i32
    %42 = vector.broadcast %c0_i32_23 : i32 to vector<32x128xi32>
    %43 = arith.cmpi eq, %9, %42 : vector<32x128xi32>
    %cst = arith.constant 0.000000e+00 : f32
    %44 = vector.broadcast %cst : f32 to vector<32x128xf32>
    %45 = arith.select %43, %38, %44 : vector<32x128xi1>, vector<32x128xf32>
    %46 = arith.addf %36, %45 : vector<32x128xf32>
    %c0_i32_24 = arith.constant 0 : i32
    %47 = vector.broadcast %c0_i32_24 : i32 to vector<32x128xi32>
    %48 = arith.cmpi eq, %14, %47 : vector<32x128xi32>
    %cst_25 = arith.constant 0.000000e+00 : f32
    %49 = vector.broadcast %cst_25 : f32 to vector<32x128xf32>
    %50 = arith.select %48, %38, %49 : vector<32x128xi1>, vector<32x128xf32>
    %51 = arith.addf %37, %50 : vector<32x128xf32>
    %c0_26 = arith.constant 0 : index
    %c128_27 = arith.constant 128 : index
    %52 = vector.load %arg2[%c0_26, %c128_27] : memref<32x1024xf32, #tpu.memory_space<vmem>>, vector<32x128xf32>
    %53 = arith.subf %52, %31 : vector<32x128xf32>
    %54 = math.exp %53 : vector<32x128xf32>
    %55 = arith.addf %41, %54 : vector<32x128xf32>
    %c128_i32 = arith.constant 128 : i32
    %56 = vector.broadcast %c128_i32 : i32 to vector<32x128xi32>
    %57 = arith.cmpi eq, %9, %56 : vector<32x128xi32>
    %cst_28 = arith.constant 0.000000e+00 : f32
    %58 = vector.broadcast %cst_28 : f32 to vector<32x128xf32>
    %59 = arith.select %57, %52, %58 : vector<32x128xi1>, vector<32x128xf32>
    %60 = arith.addf %46, %59 : vector<32x128xf32>
    %c128_i32_29 = arith.constant 128 : i32
    %61 = vector.broadcast %c128_i32_29 : i32 to vector<32x128xi32>
    %62 = arith.cmpi eq, %14, %61 : vector<32x128xi32>
    %cst_30 = arith.constant 0.000000e+00 : f32
    %63 = vector.broadcast %cst_30 : f32 to vector<32x128xf32>
    %64 = arith.select %62, %52, %63 : vector<32x128xi1>, vector<32x128xf32>
    %65 = arith.addf %51, %64 : vector<32x128xf32>
    %c0_31 = arith.constant 0 : index
    %c256_32 = arith.constant 256 : index
    %66 = vector.load %arg2[%c0_31, %c256_32] : memref<32x1024xf32, #tpu.memory_space<vmem>>, vector<32x128xf32>
    %67 = arith.subf %66, %31 : vector<32x128xf32>
    %68 = math.exp %67 : vector<32x128xf32>
    %69 = arith.addf %55, %68 : vector<32x128xf32>
    %c256_i32 = arith.constant 256 : i32
    %70 = vector.broadcast %c256_i32 : i32 to vector<32x128xi32>
    %71 = arith.cmpi eq, %9, %70 : vector<32x128xi32>
    %cst_33 = arith.constant 0.000000e+00 : f32
    %72 = vector.broadcast %cst_33 : f32 to vector<32x128xf32>
    %73 = arith.select %71, %66, %72 : vector<32x128xi1>, vector<32x128xf32>
    %74 = arith.addf %60, %73 : vector<32x128xf32>
    %c256_i32_34 = arith.constant 256 : i32
    %75 = vector.broadcast %c256_i32_34 : i32 to vector<32x128xi32>
    %76 = arith.cmpi eq, %14, %75 : vector<32x128xi32>
    %cst_35 = arith.constant 0.000000e+00 : f32
    %77 = vector.broadcast %cst_35 : f32 to vector<32x128xf32>
    %78 = arith.select %76, %66, %77 : vector<32x128xi1>, vector<32x128xf32>
    %79 = arith.addf %65, %78 : vector<32x128xf32>
    %c0_36 = arith.constant 0 : index
    %c384_37 = arith.constant 384 : index
    %80 = vector.load %arg2[%c0_36, %c384_37] : memref<32x1024xf32, #tpu.memory_space<vmem>>, vector<32x128xf32>
    %81 = arith.subf %80, %31 : vector<32x128xf32>
    %82 = math.exp %81 : vector<32x128xf32>
    %83 = arith.addf %69, %82 : vector<32x128xf32>
    %c384_i32 = arith.constant 384 : i32
    %84 = vector.broadcast %c384_i32 : i32 to vector<32x128xi32>
    %85 = arith.cmpi eq, %9, %84 : vector<32x128xi32>
    %cst_38 = arith.constant 0.000000e+00 : f32
    %86 = vector.broadcast %cst_38 : f32 to vector<32x128xf32>
    %87 = arith.select %85, %80, %86 : vector<32x128xi1>, vector<32x128xf32>
    %88 = arith.addf %74, %87 : vector<32x128xf32>
    %c384_i32_39 = arith.constant 384 : i32
    %89 = vector.broadcast %c384_i32_39 : i32 to vector<32x128xi32>
    %90 = arith.cmpi eq, %14, %89 : vector<32x128xi32>
    %cst_40 = arith.constant 0.000000e+00 : f32
    %91 = vector.broadcast %cst_40 : f32 to vector<32x128xf32>
    %92 = arith.select %90, %80, %91 : vector<32x128xi1>, vector<32x128xf32>
    %93 = arith.addf %79, %92 : vector<32x128xf32>
    %c0_41 = arith.constant 0 : index
    %c512_42 = arith.constant 512 : index
    %94 = vector.load %arg2[%c0_41, %c512_42] : memref<32x1024xf32, #tpu.memory_space<vmem>>, vector<32x128xf32>
    %95 = arith.subf %94, %31 : vector<32x128xf32>
    %96 = math.exp %95 : vector<32x128xf32>
    %97 = arith.addf %83, %96 : vector<32x128xf32>
    %c512_i32 = arith.constant 512 : i32
    %98 = vector.broadcast %c512_i32 : i32 to vector<32x128xi32>
    %99 = arith.cmpi eq, %9, %98 : vector<32x128xi32>
    %cst_43 = arith.constant 0.000000e+00 : f32
    %100 = vector.broadcast %cst_43 : f32 to vector<32x128xf32>
    %101 = arith.select %99, %94, %100 : vector<32x128xi1>, vector<32x128xf32>
    %102 = arith.addf %88, %101 : vector<32x128xf32>
    %c512_i32_44 = arith.constant 512 : i32
    %103 = vector.broadcast %c512_i32_44 : i32 to vector<32x128xi32>
    %104 = arith.cmpi eq, %14, %103 : vector<32x128xi32>
    %cst_45 = arith.constant 0.000000e+00 : f32
    %105 = vector.broadcast %cst_45 : f32 to vector<32x128xf32>
    %106 = arith.select %104, %94, %105 : vector<32x128xi1>, vector<32x128xf32>
    %107 = arith.addf %93, %106 : vector<32x128xf32>
    %c0_46 = arith.constant 0 : index
    %c640_47 = arith.constant 640 : index
    %108 = vector.load %arg2[%c0_46, %c640_47] : memref<32x1024xf32, #tpu.memory_space<vmem>>, vector<32x128xf32>
    %109 = arith.subf %108, %31 : vector<32x128xf32>
    %110 = math.exp %109 : vector<32x128xf32>
    %111 = arith.addf %97, %110 : vector<32x128xf32>
    %c640_i32 = arith.constant 640 : i32
    %112 = vector.broadcast %c640_i32 : i32 to vector<32x128xi32>
    %113 = arith.cmpi eq, %9, %112 : vector<32x128xi32>
    %cst_48 = arith.constant 0.000000e+00 : f32
    %114 = vector.broadcast %cst_48 : f32 to vector<32x128xf32>
    %115 = arith.select %113, %108, %114 : vector<32x128xi1>, vector<32x128xf32>
    %116 = arith.addf %102, %115 : vector<32x128xf32>
    %c640_i32_49 = arith.constant 640 : i32
    %117 = vector.broadcast %c640_i32_49 : i32 to vector<32x128xi32>
    %118 = arith.cmpi eq, %14, %117 : vector<32x128xi32>
    %cst_50 = arith.constant 0.000000e+00 : f32
    %119 = vector.broadcast %cst_50 : f32 to vector<32x128xf32>
    %120 = arith.select %118, %108, %119 : vector<32x128xi1>, vector<32x128xf32>
    %121 = arith.addf %107, %120 : vector<32x128xf32>
    %c0_51 = arith.constant 0 : index
    %c768_52 = arith.constant 768 : index
    %122 = vector.load %arg2[%c0_51, %c768_52] : memref<32x1024xf32, #tpu.memory_space<vmem>>, vector<32x128xf32>
    %123 = arith.subf %122, %31 : vector<32x128xf32>
    %124 = math.exp %123 : vector<32x128xf32>
    %125 = arith.addf %111, %124 : vector<32x128xf32>
    %c768_i32 = arith.constant 768 : i32
    %126 = vector.broadcast %c768_i32 : i32 to vector<32x128xi32>
    %127 = arith.cmpi eq, %9, %126 : vector<32x128xi32>
    %cst_53 = arith.constant 0.000000e+00 : f32
    %128 = vector.broadcast %cst_53 : f32 to vector<32x128xf32>
    %129 = arith.select %127, %122, %128 : vector<32x128xi1>, vector<32x128xf32>
    %130 = arith.addf %116, %129 : vector<32x128xf32>
    %c768_i32_54 = arith.constant 768 : i32
    %131 = vector.broadcast %c768_i32_54 : i32 to vector<32x128xi32>
    %132 = arith.cmpi eq, %14, %131 : vector<32x128xi32>
    %cst_55 = arith.constant 0.000000e+00 : f32
    %133 = vector.broadcast %cst_55 : f32 to vector<32x128xf32>
    %134 = arith.select %132, %122, %133 : vector<32x128xi1>, vector<32x128xf32>
    %135 = arith.addf %121, %134 : vector<32x128xf32>
    %c0_56 = arith.constant 0 : index
    %c896_57 = arith.constant 896 : index
    %136 = vector.load %arg2[%c0_56, %c896_57] : memref<32x1024xf32, #tpu.memory_space<vmem>>, vector<32x128xf32>
    %137 = arith.subf %136, %31 : vector<32x128xf32>
    %138 = math.exp %137 : vector<32x128xf32>
    %139 = arith.addf %125, %138 : vector<32x128xf32>
    %c896_i32 = arith.constant 896 : i32
    %140 = vector.broadcast %c896_i32 : i32 to vector<32x128xi32>
    %141 = arith.cmpi eq, %9, %140 : vector<32x128xi32>
    %cst_58 = arith.constant 0.000000e+00 : f32
    %142 = vector.broadcast %cst_58 : f32 to vector<32x128xf32>
    %143 = arith.select %141, %136, %142 : vector<32x128xi1>, vector<32x128xf32>
    %144 = arith.addf %130, %143 : vector<32x128xf32>
    %c896_i32_59 = arith.constant 896 : i32
    %145 = vector.broadcast %c896_i32_59 : i32 to vector<32x128xi32>
    %146 = arith.cmpi eq, %14, %145 : vector<32x128xi32>
    %cst_60 = arith.constant 0.000000e+00 : f32
    %147 = vector.broadcast %cst_60 : f32 to vector<32x128xf32>
    %148 = arith.select %146, %136, %147 : vector<32x128xi1>, vector<32x128xf32>
    %149 = arith.addf %135, %148 : vector<32x128xf32>
    %c0_61 = arith.constant 0 : index
    %c0_62 = arith.constant 0 : index
    %150 = vector.load %arg8[%c0_61, %c0_62] : memref<32x128xf32, #tpu.memory_space<vmem>>, vector<32x128xf32>
    tpu.vector_store %arg8[%c0_61, %c0_62], %31 {strides = array<i32>} : memref<32x128xf32, #tpu.memory_space<vmem>>, vector<32x128xf32>,
    %c0_63 = arith.constant 0 : index
    %c0_64 = arith.constant 0 : index
    %151 = vector.load %arg9[%c0_63, %c0_64] : memref<32x128xf32, #tpu.memory_space<vmem>>, vector<32x128xf32>
    tpu.vector_store %arg9[%c0_63, %c0_64], %139 {strides = array<i32>} : memref<32x128xf32, #tpu.memory_space<vmem>>, vector<32x128xf32>,
    %c0_65 = arith.constant 0 : index
    %c0_66 = arith.constant 0 : index
    %152 = vector.load %arg10[%c0_65, %c0_66] : memref<32x128xf32, #tpu.memory_space<vmem>>, vector<32x128xf32>
    tpu.vector_store %arg10[%c0_65, %c0_66], %144 {strides = array<i32>} : memref<32x128xf32, #tpu.memory_space<vmem>>, vector<32x128xf32>,
    %c0_67 = arith.constant 0 : index
    %c0_68 = arith.constant 0 : index
    %153 = vector.load %arg11[%c0_67, %c0_68] : memref<32x128xf32, #tpu.memory_space<vmem>>, vector<32x128xf32>
    tpu.vector_store %arg11[%c0_67, %c0_68], %149 {strides = array<i32>} : memref<32x128xf32, #tpu.memory_space<vmem>>, vector<32x128xf32>,
    %c0_i32_69 = arith.constant 0 : i32
    %154 = arith.cmpi eq, %arg1, %c0_i32_69 : i32
    %155 = arith.extui %154 : i1 to i32
    %c0_i32_70 = arith.constant 0 : i32
    %156 = arith.cmpi ne, %155, %c0_i32_70 : i32
    scf.if %156 {
      %c0_71 = arith.constant 0 : index
      %c0_72 = arith.constant 0 : index
      %157 = vector.load %arg8[%c0_71, %c0_72] : memref<32x128xf32, #tpu.memory_space<vmem>>, vector<32x128xf32>
      %cst_73 = arith.constant dense<0xFF800000> : vector<32xf32>
      %158 = vector.multi_reduction <maximumf>, %157, %cst_73 [1] : vector<32x128xf32> to vector<32xf32>
      %159 = vector.shape_cast %158 : vector<32xf32> to vector<32x1xf32>
      %c0_74 = arith.constant 0 : index
      %c0_75 = arith.constant 0 : index
      %160 = vector.load %arg9[%c0_74, %c0_75] : memref<32x128xf32, #tpu.memory_space<vmem>>, vector<32x128xf32>
      %161 = vector.broadcast %159 : vector<32x1xf32> to vector<32x128xf32>
      %162 = arith.subf %157, %161 : vector<32x128xf32>
      %163 = math.exp %162 : vector<32x128xf32>
      %164 = arith.mulf %160, %163 : vector<32x128xf32>
      %cst_76 = arith.constant dense<0.000000e+00> : vector<32xf32>
      %165 = vector.multi_reduction <add>, %164, %cst_76 [1] : vector<32x128xf32> to vector<32xf32>
      %166 = vector.shape_cast %165 : vector<32xf32> to vector<32x1xf32>
      %c0_77 = arith.constant 0 : index
      %c0_78 = arith.constant 0 : index
      %167 = vector.load %arg10[%c0_77, %c0_78] : memref<32x128xf32, #tpu.memory_space<vmem>>, vector<32x128xf32>
      %cst_79 = arith.constant dense<0.000000e+00> : vector<32xf32>
      %168 = vector.multi_reduction <add>, %167, %cst_79 [1] : vector<32x128xf32> to vector<32xf32>
      %169 = vector.shape_cast %168 : vector<32xf32> to vector<32x1xf32>
      %c0_80 = arith.constant 0 : index
      %c0_81 = arith.constant 0 : index
      %170 = vector.load %arg11[%c0_80, %c0_81] : memref<32x128xf32, #tpu.memory_space<vmem>>, vector<32x128xf32>
      %cst_82 = arith.constant dense<0.000000e+00> : vector<32xf32>
      %171 = vector.multi_reduction <add>, %170, %cst_82 [1] : vector<32x128xf32> to vector<32xf32>
      %172 = vector.shape_cast %171 : vector<32xf32> to vector<32x1xf32>
      %173 = math.log %166 : vector<32x1xf32>
      %174 = arith.addf %159, %173 : vector<32x1xf32>
      %175 = arith.subf %174, %169 : vector<32x1xf32>
      %cst_83 = arith.constant dense<0.000000e+00> : vector<1xf32>
      %176 = vector.multi_reduction <add>, %175, %cst_83 [0] : vector<32x1xf32> to vector<1xf32>
      %177 = vector.shape_cast %176 : vector<1xf32> to vector<1x1xf32>
      %cst_84 = arith.constant 1.562500e-02 : f32
      %178 = vector.broadcast %cst_84 : f32 to vector<1x1xf32>
      %179 = arith.mulf %177, %178 : vector<1x1xf32>
      %c0_85 = arith.constant 0 : index
      %c0_86 = arith.constant 0 : index
      %180 = vector.load %arg5[%c0_85, %c0_86] : memref<32x1xf32, #tpu.memory_space<vmem>>, vector<32x1xf32>
      %c0_87 = arith.constant 0 : index
      %c0_88 = arith.constant 0 : index
      %181 = vector.load %arg6[%c0_87, %c0_88] : memref<1x1xf32, #tpu.memory_space<vmem>>, vector<1x1xf32>
      %182 = tpu.iota {dimensions = array<i32: 0>} : vector<16x1xi32>
      %c4_i32 = arith.constant 4 : i32
      %183 = vector.broadcast %c4_i32 : i32 to vector<16x1xi32>
      %184 = arith.cmpi sge, %182, %183 : vector<16x1xi32>
      %c4_i32_89 = arith.constant 4 : i32
      %185 = vector.broadcast %c4_i32_89 : i32 to vector<16x1xi32>
      %186 = arith.cmpi slt, %182, %185 : vector<16x1xi32>
      %cst_90 = arith.constant 0.000000e+00 : f32
      %187 = vector.broadcast %cst_90 : f32 to vector<1x1xf32>
      %188 = vector.extract_strided_slice %172 {offsets = [0, 0], sizes = [16, 1], strides = [1, 1]} : vector<32x1xf32> to vector<16x1xf32>
      %189 = vector.extract_strided_slice %180 {offsets = [0, 0], sizes = [16, 1], strides = [1, 1]} : vector<32x1xf32> to vector<16x1xf32>
      %cst_91 = arith.constant 0xFF800000 : f32
      %190 = vector.broadcast %cst_91 : f32 to vector<16x1xf32>
      %191 = arith.select %184, %188, %190 : vector<16x1xi1>, vector<16x1xf32>
      %cst_92 = arith.constant dense<0xFF800000> : vector<1xf32>
      %192 = vector.multi_reduction <maximumf>, %191, %cst_92 [0] : vector<16x1xf32> to vector<1xf32>
      %193 = vector.shape_cast %192 : vector<1xf32> to vector<1x1xf32>
      %194 = vector.broadcast %193 : vector<1x1xf32> to vector<16x1xf32>
      %195 = arith.subf %188, %194 : vector<16x1xf32>
      %cst_93 = arith.constant 1.000000e+00 : f32
      %196 = vector.broadcast %cst_93 : f32 to vector<16x1xf32>
      %197 = arith.mulf %195, %196 : vector<16x1xf32>
      %198 = math.exp %197 : vector<16x1xf32>
      %cst_94 = arith.constant 0.000000e+00 : f32
      %199 = vector.broadcast %cst_94 : f32 to vector<16x1xf32>
      %200 = arith.select %184, %198, %199 : vector<16x1xi1>, vector<16x1xf32>
      %cst_95 = arith.constant dense<0.000000e+00> : vector<1xf32>
      %201 = vector.multi_reduction <add>, %200, %cst_95 [0] : vector<16x1xf32> to vector<1xf32>
      %202 = vector.shape_cast %201 : vector<1xf32> to vector<1x1xf32>
      %203 = arith.mulf %200, %195 : vector<16x1xf32>
      %cst_96 = arith.constant dense<0.000000e+00> : vector<1xf32>
      %204 = vector.multi_reduction <add>, %203, %cst_96 [0] : vector<16x1xf32> to vector<1xf32>
      %205 = vector.shape_cast %204 : vector<1xf32> to vector<1x1xf32>
      %cst_97 = arith.constant 0.000000e+00 : f32
      %206 = vector.broadcast %cst_97 : f32 to vector<16x1xf32>
      %207 = arith.subf %206, %195 : vector<16x1xf32>
      %cst_98 = arith.constant 1.000000e+00 : f32
      %208 = vector.broadcast %cst_98 : f32 to vector<16x1xf32>
      %209 = arith.mulf %207, %208 : vector<16x1xf32>
      %210 = math.exp %209 : vector<16x1xf32>
      %cst_99 = arith.constant 0.0833333358 : f32
      %211 = vector.broadcast %cst_99 : f32 to vector<1x1xf32>
      %212 = arith.mulf %202, %211 : vector<1x1xf32>
      %213 = vector.broadcast %212 : vector<1x1xf32> to vector<16x1xf32>
      %214 = arith.mulf %210, %213 : vector<16x1xf32>
      %cst_100 = arith.constant 1.000000e+00 : f32
      %215 = vector.broadcast %cst_100 : f32 to vector<1x1xf32>
      %216 = arith.subf %215, %181 : vector<1x1xf32>
      %217 = vector.broadcast %216 : vector<1x1xf32> to vector<16x1xf32>
      %218 = arith.mulf %217, %189 : vector<16x1xf32>
      %cst_101 = arith.constant 9.99999997E-7 : f32
      %219 = vector.broadcast %cst_101 : f32 to vector<16x1xf32>
      %220 = arith.addf %214, %219 : vector<16x1xf32>
      %221 = vector.broadcast %181 : vector<1x1xf32> to vector<16x1xf32>
      %222 = arith.mulf %221, %220 : vector<16x1xf32>
      %223 = arith.addf %218, %222 : vector<16x1xf32>
      %224 = vector.broadcast %202 : vector<1x1xf32> to vector<16x1xf32>
      %225 = arith.mulf %195, %224 : vector<16x1xf32>
      %226 = vector.broadcast %205 : vector<1x1xf32> to vector<16x1xf32>
      %227 = arith.subf %226, %225 : vector<16x1xf32>
      %228 = arith.mulf %210, %227 : vector<16x1xf32>
      %cst_102 = arith.constant 0.0833333358 : f32
      %229 = vector.broadcast %cst_102 : f32 to vector<16x1xf32>
      %230 = arith.mulf %228, %229 : vector<16x1xf32>
      %231 = arith.divf %230, %223 : vector<16x1xf32>
      %cst_103 = arith.constant 0.000000e+00 : f32
      %232 = vector.broadcast %cst_103 : f32 to vector<16x1xf32>
      %233 = arith.select %186, %231, %232 : vector<16x1xi1>, vector<16x1xf32>
      %cst_104 = arith.constant dense<0.000000e+00> : vector<1xf32>
      %234 = vector.multi_reduction <add>, %233, %cst_104 [0] : vector<16x1xf32> to vector<1xf32>
      %235 = vector.shape_cast %234 : vector<1xf32> to vector<1x1xf32>
      %236 = arith.addf %187, %235 : vector<1x1xf32>
      %237 = vector.extract_strided_slice %172 {offsets = [16, 0], sizes = [16, 1], strides = [1, 1]} : vector<32x1xf32> to vector<16x1xf32>
      %238 = vector.extract_strided_slice %180 {offsets = [16, 0], sizes = [16, 1], strides = [1, 1]} : vector<32x1xf32> to vector<16x1xf32>
      %cst_105 = arith.constant 0xFF800000 : f32
      %239 = vector.broadcast %cst_105 : f32 to vector<16x1xf32>
      %240 = arith.select %184, %237, %239 : vector<16x1xi1>, vector<16x1xf32>
      %cst_106 = arith.constant dense<0xFF800000> : vector<1xf32>
      %241 = vector.multi_reduction <maximumf>, %240, %cst_106 [0] : vector<16x1xf32> to vector<1xf32>
      %242 = vector.shape_cast %241 : vector<1xf32> to vector<1x1xf32>
      %243 = vector.broadcast %242 : vector<1x1xf32> to vector<16x1xf32>
      %244 = arith.subf %237, %243 : vector<16x1xf32>
      %cst_107 = arith.constant 1.000000e+00 : f32
      %245 = vector.broadcast %cst_107 : f32 to vector<16x1xf32>
      %246 = arith.mulf %244, %245 : vector<16x1xf32>
      %247 = math.exp %246 : vector<16x1xf32>
      %cst_108 = arith.constant 0.000000e+00 : f32
      %248 = vector.broadcast %cst_108 : f32 to vector<16x1xf32>
      %249 = arith.select %184, %247, %248 : vector<16x1xi1>, vector<16x1xf32>
      %cst_109 = arith.constant dense<0.000000e+00> : vector<1xf32>
      %250 = vector.multi_reduction <add>, %249, %cst_109 [0] : vector<16x1xf32> to vector<1xf32>
      %251 = vector.shape_cast %250 : vector<1xf32> to vector<1x1xf32>
      %252 = arith.mulf %249, %244 : vector<16x1xf32>
      %cst_110 = arith.constant dense<0.000000e+00> : vector<1xf32>
      %253 = vector.multi_reduction <add>, %252, %cst_110 [0] : vector<16x1xf32> to vector<1xf32>
      %254 = vector.shape_cast %253 : vector<1xf32> to vector<1x1xf32>
      %cst_111 = arith.constant 0.000000e+00 : f32
      %255 = vector.broadcast %cst_111 : f32 to vector<16x1xf32>
      %256 = arith.subf %255, %244 : vector<16x1xf32>
      %cst_112 = arith.constant 1.000000e+00 : f32
      %257 = vector.broadcast %cst_112 : f32 to vector<16x1xf32>
      %258 = arith.mulf %256, %257 : vector<16x1xf32>
      %259 = math.exp %258 : vector<16x1xf32>
      %cst_113 = arith.constant 0.0833333358 : f32
      %260 = vector.broadcast %cst_113 : f32 to vector<1x1xf32>
      %261 = arith.mulf %251, %260 : vector<1x1xf32>
      %262 = vector.broadcast %261 : vector<1x1xf32> to vector<16x1xf32>
      %263 = arith.mulf %259, %262 : vector<16x1xf32>
      %cst_114 = arith.constant 1.000000e+00 : f32
      %264 = vector.broadcast %cst_114 : f32 to vector<1x1xf32>
      %265 = arith.subf %264, %181 : vector<1x1xf32>
      %266 = vector.broadcast %265 : vector<1x1xf32> to vector<16x1xf32>
      %267 = arith.mulf %266, %238 : vector<16x1xf32>
      %cst_115 = arith.constant 9.99999997E-7 : f32
      %268 = vector.broadcast %cst_115 : f32 to vector<16x1xf32>
      %269 = arith.addf %263, %268 : vector<16x1xf32>
      %270 = vector.broadcast %181 : vector<1x1xf32> to vector<16x1xf32>
      %271 = arith.mulf %270, %269 : vector<16x1xf32>
      %272 = arith.addf %267, %271 : vector<16x1xf32>
      %273 = vector.broadcast %251 : vector<1x1xf32> to vector<16x1xf32>
      %274 = arith.mulf %244, %273 : vector<16x1xf32>
      %275 = vector.broadcast %254 : vector<1x1xf32> to vector<16x1xf32>
      %276 = arith.subf %275, %274 : vector<16x1xf32>
      %277 = arith.mulf %259, %276 : vector<16x1xf32>
      %cst_116 = arith.constant 0.0833333358 : f32
      %278 = vector.broadcast %cst_116 : f32 to vector<16x1xf32>
      %279 = arith.mulf %277, %278 : vector<16x1xf32>
      %280 = arith.divf %279, %272 : vector<16x1xf32>
      %cst_117 = arith.constant 0.000000e+00 : f32
      %281 = vector.broadcast %cst_117 : f32 to vector<16x1xf32>
      %282 = arith.select %186, %280, %281 : vector<16x1xi1>, vector<16x1xf32>
      %cst_118 = arith.constant dense<0.000000e+00> : vector<1xf32>
      %283 = vector.multi_reduction <add>, %282, %cst_118 [0] : vector<16x1xf32> to vector<1xf32>
      %284 = vector.shape_cast %283 : vector<1xf32> to vector<1x1xf32>
      %285 = arith.addf %236, %284 : vector<1x1xf32>
      %cst_119 = arith.constant 6.250000e-02 : f32
      %286 = vector.broadcast %cst_119 : f32 to vector<1x1xf32>
      %287 = arith.mulf %285, %286 : vector<1x1xf32>
      %cst_120 = arith.constant 1.000000e+00 : f32
      %288 = vector.broadcast %cst_120 : f32 to vector<1x1xf32>
      %289 = arith.mulf %288, %287 : vector<1x1xf32>
      %290 = arith.addf %179, %289 : vector<1x1xf32>
      %291 = vector.shape_cast %290 : vector<1x1xf32> to vector<1x1xf32>
      %292 = vector.broadcast %291 : vector<1x1xf32> to vector<8x128xf32>
      %c0_121 = arith.constant 0 : index
      %c0_122 = arith.constant 0 : index
      %293 = vector.load %arg7[%c0_121, %c0_122] : memref<8x128xf32, #tpu.memory_space<vmem>>, vector<8x128xf32>
      tpu.vector_store %arg7[%c0_121, %c0_122], %292 {strides = array<i32>} : memref<8x128xf32, #tpu.memory_space<vmem>>, vector<8x128xf32>,
    } else {
    }
    return
  }
  func.func @transform_0(%arg0: i32, %arg1: i32) -> (i32, i32) {
    %c0_i32 = arith.constant 0 : i32
    return %arg0, %arg1 : i32, i32
  }
  func.func @transform_1(%arg0: i32, %arg1: i32) -> (i32, i32) {
    %c0_i32 = arith.constant 0 : i32
    %c0_i32_0 = arith.constant 0 : i32
    return %arg0, %c0_i32 : i32, i32
  }
  func.func @transform_2(%arg0: i32, %arg1: i32) -> (i32, i32) {
    %c0_i32 = arith.constant 0 : i32
    %c0_i32_0 = arith.constant 0 : i32
    return %arg0, %c0_i32 : i32, i32
  }
  func.func @transform_3(%arg0: i32, %arg1: i32) -> (i32, i32) {
    %c0_i32 = arith.constant 0 : i32
    %c0_i32_0 = arith.constant 0 : i32
    return %arg0, %c0_i32 : i32, i32
  }
  func.func @transform_4(%arg0: i32, %arg1: i32) -> (i32, i32) {
    %c0_i32 = arith.constant 0 : i32
    %c0_i32_0 = arith.constant 0 : i32
    %c0_i32_1 = arith.constant 0 : i32
    return %c0_i32, %c0_i32_0 : i32, i32
  }
  func.func @transform_5(%arg0: i32, %arg1: i32) -> (i32, i32) {
    %c0_i32 = arith.constant 0 : i32
    %c0_i32_0 = arith.constant 0 : i32
    return %arg0, %c0_i32 : i32, i32
  }
}

</mosaic_0001>

<bundles_post_ra>
// kernel: tpu_custom_call.1
= control target key start
LH: loop header
LB: loop body
LE: loop exit
PB: predicated region body
PF: predicated region fallthrough
CT: control target
= control target key end

     0   :  { %s2201_s0 = inlined_call_operand.hbm [shape: f32[64,1024], index: 0, kind: input, shape index: {}]   ;;  %s2202_s1 = inlined_call_operand.vmem [shape: s32[64,1], index: 1, kind: input, shape index: {}]   ;;  %s2203_s2 = inlined_call_operand.vmem [shape: s32[64,1], index: 2, kind: input, shape index: {}]   ;;  %s2204_s3 = inlined_call_operand.vmem [shape: f32[64,1], index: 3, kind: input, shape index: {}]   ;;  %s2205_s4 = inlined_call_operand.<no memory space> [shape: f32[1,1], index: 4, kind: input, shape index: {}]   ;;  %s2206_s5 = inlined_call_operand.hbm [shape: f32[16,128], index: 5, kind: output, shape index: {}]  }
   0x1   :  { %v10_v0 = vstv %s2205_s4 }
   0x2   :  { %11 = vst [vmem:[#allocation6] sm:$0x1] %v10_v0 }
   0x3   :  { %12 = vsyncpa [#allocation8], 0 }
   0x4   :  { %14 = vsyncpa [#allocation8 + $0x1], 0 }
   0x5   :  { %15 = vsyncpa [#allocation9], 0 }
   0x6   :  { %17 = vsyncpa [#allocation9 + $0x1], 0  ;;  %s1644_s20 = smov 0   ;;  %s1646_s21 = smov 0  }
   0x7   :  { %s1648_s22 = smov 0   ;;  %s1650_s23 = smov 0  }
   0x8   :  { %s1652_s24 = smov 0   ;;  %s1654_s25 = smov 0  }
   0x9 LB: > { %s1290_s4 = sadd.s32 4294967295, %s1606_s25   ;;  %s1291_s26 = sadd.s32 4294967294, %s1606_s25   ;;  %s1606_s25 = sphi %s1654_s25, %s23_s25   ;;  %s1602_s24 = sphi %s1652_s24, %s2217_s24   ;;  %s1598_s23 = sphi %s1650_s23, %s2216_s23   ;;  %s1594_s22 = sphi %s1648_s22, %s2215_s22   ;;  %s1590_s21 = sphi %s1646_s21, %s2214_s21   ;;  %s1586_s20 = sphi %s1644_s20, %s2213_s20  }
   0xa   : > { %s35_s27 = sadd.s32 1, %s1602_s24  ;;  %s44_s28 = sadd.s32 1, %s1594_s22 }
   0xb   : > { %p37_p0 = scmp.ge.s32.totalorder %s35_s27, 2  ;;  %p51_p1 = scmp.ne.s32.totalorder %s1594_s22, %s1590_s21 }
   0xc   : > { %p52_p2 = scmp.eq.s32.totalorder %s1606_s25, 0  ;;  %p57_p3 = scmp.ne.s32.totalorder %s1590_s21, %s1586_s20 }
   0xd   : > { %s2219_s27 = smov (%p37_p0, %s35_s27), 0  ;;  %p58_p5 = scmp.eq.s32.totalorder %s1290_s4, 0 }
   0xe   : > { %p1685_p4 = por %p52_p2, %p51_p1  ;;  %s39_s30 = ssub.s32 %s1602_s24, %s2219_s27 }
   0xf   : > { %p180_p6 = scmp.eq.s32.totalorder %s1290_s4, 1  ;;  %p42_p7 = scmp.eq.s32.totalorder %s39_s30, 0 }
  0x10   : > { %p1691_p8 = por %p58_p5, %p57_p3  ;;  %p186_p10 = scmp.eq.s32.totalorder %s1291_s26, 1 }
  0x11   : > { %p1695_p9 = por %p180_p6, %p51_p1  ;;  %p1293_p12 = scmp.ge.s32.totalorder %s1606_s25, 2 }
  0x12   : > { %s1700_s8 = scalar_select %p42_p7, %s1594_s22, %s44_s28  }
  0x13   : > { %p1702_p11 = por %p186_p10, %p57_p3  ;;  %p1325_p13 = scmp.lt.s32.totalorder %s1606_s25, 2 }
  0x14   : > { %s209_s10 = sand.u32 1, %s1594_s22   ;;  %s1312_s12 = sshll.u32 %s1602_s24, 8 }
  0x15   : > { %s1294_s11 = sshll.u32 %s209_s10, 8  ;;  %s221_s15 = scalar_lea.hbm %s2201_s0, %s1312_s12 }
  0x16   : > { %s213_s16 = scalar_lea.vmem [#allocation7], %s1294_s11  ;;  %s222_s18 = sshll.u32 %s221_s15, 4  ;;  %s223_s18 = int_to_ptr.hbm [resolvable:$true] %s222_s18 }
  0x17   : > { %s224_s17 = sshll.u32 %s213_s16, 4  ;;  %p1318_p0 = pnand %p1325_p13, %p1685_p4  ;;  %s225_s17 = int_to_ptr.vmem [resolvable:$true] %s224_s17 }
  0x18   : > { %p1298_p1 = scmp.ge.s32.totalorder %s1606_s25, 1  ;;  %s210_s19 = scalar_lea.sflag [#allocation8], %s209_s10 }
  0x19   : > { %s1608_s4 = smov 1024   ;;  %s1609_s26 = smov 64  }
  0x1a   : > { %1320 = dma.hbm_to_vmem [thread:$0]  (!%p1318_p0), %s223_s18, 4096, %s225_s17, %s210_s19, %s1608_s4, %s1608_s4, %s1609_s26  }
  0x1b   : > { %p259_p2 = scmp.lt.s32.totalorder %s1606_s25, 3 }
  0x1d   : > { %p260_p3 = pnand %p1298_p1, %p259_p2 }
  0x1e   : > { %s1718_s28 = sand.u32 (!%p260_p3), 1, %s1590_s21  }
  0x1f   : > { %263 = sbr.rel (%p260_p3) target bundleno = 606 (0x25e), region = 40  ;;  %s1299_s30 = sshll.u32 (!%p260_p3), %s1718_s28, 8 }
  0x20   : > { %s266_s11 = scalar_lea.sflag (!%p260_p3), [#allocation8], %s1718_s28  ;;  %s1722_s12 = scalar_lea.vmem (!%p260_p3), [#allocation7], %s1299_s30 }
  0x24   : > { %1577 = dma.done.wait (%p1691_p8), %s266_s11, 4096  }
  0x25   : > { %1579 = vsyncadd (%p1691_p8), %s266_s11, 4294963200  ;;  %s1301_s29 = sshll.u32 %s1598_s23, 2  ;;  %v1610_v1 = vmov 0   ;;  %v1736_v4 = vld [vmem:[%s1722_s12] sm:$0xff]  ;;  %v1739_v5 = vld [vmem:[%s1722_s12 + $0x8] sm:$0xff]  ;;  %s1300_s26 = sshll.u32 %s1718_s28, 3 }
  0x26   : > { %1379 = vset.pattern.permute.xlu1 %v1610_v1  ;;  %1378 = vset.pattern.permute.xlu0 %v1610_v1  ;;  %p315_p4 = scmp.lt.s32.totalorder %s1301_s29, 7  ;;  %v1742_v6 = vld [vmem:[%s1722_s12 + $0x10] sm:$0xff]  ;;  %v416_v7 = vmax.f32 %v1736_v4, %v1739_v5  ;;  %v1747_v8 = vld [vmem:[%s1722_s12 + $0x18] sm:$0xff]  ;;  %v1750_v9 = vld [vmem:[%s1722_s12 + $0x40] sm:$0xff]  ;;  %s1308_s30 = sshll.u32 %s1598_s23, 3 }
  0x27   : > { %1380 = vset.pattern.permute.xlu2 %v1610_v1  ;;  %v1753_v10 = vld [vmem:[%s1722_s12 + $0x48] sm:$0xff]  ;;  %v1759_v14 = vld [vmem:[%s1722_s12 + $0x50] sm:$0xff]  ;;  %v1762_v16 = vld [vmem:[%s1722_s12 + $0x20] sm:$0xff]  ;;  %s1544_s18 = scalar_lea.hbm %s2206_s5, 16 }
  0x28   : > { %s2221_s29 = smov (!%p315_p4, %s1301_s29), 7  ;;  %v424_v12 = vmax.f32 %v416_v7, %v1742_v6  ;;  %v417_v13 = vmax.f32 %v1750_v9, %v1753_v10  ;;  %v1765_v17 = vld [vmem:[%s1722_s12 + $0x58] sm:$0xff]  ;;  %v1770_v20 = vld [vmem:[%s1722_s12 + $0x80] sm:$0xff]  ;;  %v1773_v21 = vld [vmem:[%s1722_s12 + $0x88] sm:$0xff] }
  0x29   : > { %s1729_s10 = sshll.u32 %s2221_s29, 3  ;;  %v1776_v22 = vld [vmem:[%s1722_s12 + $0x90] sm:$0xff]  ;;  %v1779_v23 = vld [vmem:[%s1722_s12 + $0x28] sm:$0xff]  ;;  %v1782_v24 = vld [vmem:[%s1722_s12 + $0x60] sm:$0xff]  ;;  %v418_v25 = vmax.f32 %v1770_v20, %v1773_v21  ;;  %s1168_s29 = scalar_lea.hbm %s2206_s5, %s1308_s30 }
  0x2a   : > { %s324_s14 = scalar_lea.vmem %s2203_s2, %s1729_s10  ;;  %v432_v18 = vmax.f32 %v424_v12, %v1747_v8  ;;  %v425_v19 = vmax.f32 %v417_v13, %v1759_v14  ;;  %v1788_v27 = vld [vmem:[%s1722_s12 + $0x30] sm:$0xff]  ;;  %v1792_v29 = vld [vmem:[%s1722_s12 + $0x68] sm:$0xff]  ;;  %v1796_v31 = vld [vmem:[%s1722_s12 + $0x98] sm:$0xff]  ;;  %s1879_s17 = scalar_lea.vmem %s2202_s1, %s1729_s10 }
  0x2b   : > { %v381_v2 = vld [vmem:[%s324_s14 + $0x8] sm:$0xff]  ;;  %v380_v3 = vld [vmem:[%s324_s14] sm:$0xff]  ;;  %v383_v11 = vld [vmem:[%s324_s14 + $0x18] sm:$0xff]  ;;  %v426_v30 = vmax.f32 %v418_v25, %v1776_v22  ;;  %s2115_s4 = scalar_lea.vmem %s2204_s3, %s1729_s10  ;;  %s311_s10 = scalar_lea.vmem [#allocation10], %s1300_s26 }
  0x2c   : > { %392 = vperm.xlu1 %1379, %v381_v2   ;;  %389 = vperm.xlu0 %1378, %v380_v3   ;;  %v382_v15 = vld [vmem:[%s324_s14 + $0x10] sm:$0xff]  ;;  %v440_v26 = vmax.f32 %v432_v18, %v1762_v16  ;;  %v433_v28 = vmax.f32 %v425_v19, %v1765_v17  ;;  %v1799_v32 = vld [vmem:[%s1722_s12 + $0xc0] sm:$0xff]  ;;  %v1807_v36 = vld [vmem:[%s1722_s12 + $0x38] sm:$0xff]  ;;  %v2207_v3 = vlaneseq  ;;  %s1170_s13 = sshll.u32 %s311_s10, 4  ;;  %s1172_s6 = sshll.u32 %s1168_s29, 4  ;;  %s1171_s13 = int_to_ptr.vmem [resolvable:$true] %s1170_s13  ;;  %s1173_s6 = int_to_ptr.hbm [resolvable:$true] %s1172_s6 }
  0x2d   : > { %v1802_v33 = vld [vmem:[%s1722_s12 + $0xc8] sm:$0xff]  ;;  %v434_v39 = vmax.f32 %v426_v30, %v1796_v31  ;;  %v1815_v41 = vld [vmem:[%s1722_s12 + $0x70] sm:$0xff]  ;;  %v1818_v42 = vld [vmem:[%s1722_s12 + $0xa0] sm:$0xff]  ;;  %s1158_s14 = scalar_lea.sflag [#allocation9], %s1718_s28  ;;  %s1538_s15 = sshra.s32 %s1173_s6, 4  ;;  %s1539_s15 = int_to_ptr.hbm [resolvable:$true] %s1538_s15 }
  0x2e   : > { %v448_v34 = vmax.f32 %v440_v26, %v1779_v23  ;;  %v441_v35 = vmax.f32 %v433_v28, %v1782_v24  ;;  %v419_v40 = vmax.f32 %v1799_v32, %v1802_v33  ;;  %v1821_v43 = vld [vmem:[%s1722_s12 + $0xd0] sm:$0xff]  ;;  %v1831_v48 = vld [vmem:[%s1722_s12 + $0x78] sm:$0xff]  ;;  %v1834_v49 = vld [vmem:[%s1722_s12 + $0xa8] sm:$0xff]  ;;  %v1883_v7 = vand.u32 127, %v2207_v3  ;;  %s1540_s16 = scalar_lea.hbm %s1539_s15, 8  ;;  %p1545_p8 = scmp.lt.s32.totalorder %s1539_s15, %s2206_s5 }
  0x2f   : > { %v442_v46 = vmax.f32 %v434_v39, %v1818_v42  ;;  %v1837_v50 = vld [vmem:[%s1722_s12 + $0xd8] sm:$0xff]  ;;  %v1845_v54 = vld [vmem:[%s1722_s12 + $0xb0] sm:$0xff]  ;;  %v1848_v55 = vld [vmem:[%s1722_s12 + $0xe0] sm:$0xff]  ;;  %p1541_p5 = scmp.ne.s32.totalorder %s1539_s15, %s1540_s16  ;;  %p1546_p10 = scmp.lt.s32.totalorder %s1544_s18, %s1540_s16 }
  0x30   : > { %v456_v37 = vmax.f32 %v448_v34, %v1788_v27  ;;  %v449_v38 = vmax.f32 %v441_v35, %v1792_v29  ;;  %v427_v47 = vmax.f32 %v419_v40, %v1821_v43  ;;  %v1854_v58 = vld [vmem:[%s1722_s12 + $0xb8] sm:$0xff]  ;;  %v1857_v59 = vld [vmem:[%s1722_s12 + $0xe8] sm:$0xff]  ;;  %v1864_v62 = vld [vmem:[%s1722_s12 + $0xf0] sm:$0xff] }
  0x31   : > { %v450_v52 = vmax.f32 %v442_v46, %v1834_v49  ;;  %v1869_v0 = vld [vmem:[%s1722_s12 + $0xf8] sm:$0xff]  ;;  %p1542_p6 = pnand %p1541_p5, %p1695_p9  ;;  %p1547_p13 = por %p1546_p10, %p1545_p8 }
  0x32   : > { %v1824_v44 = vmax.f32 %v456_v37, %v1807_v36  ;;  %v457_v45 = vmax.f32 %v449_v38, %v1815_v41  ;;  %v435_v53 = vmax.f32 %v427_v47, %v1837_v50  ;;  %v355_v2 = vld [vmem:[%s1879_s17] sm:$0xff] }
  0x33   : > { %v458_v56 = vmax.f32 %v450_v52, %v1845_v54  ;;  %p1543_p7 = pneg %p1542_p6 }
  0x34   : > { %398 = vperm.xlu1 %1379, %v383_v11   ;;  %395 = vperm.xlu0 %1378, %v382_v15   ;;  %v1840_v51 = vmax.f32 %v457_v45, %v1831_v48  ;;  %v443_v57 = vmax.f32 %v435_v53, %v1848_v55 }
  0x35   : > { %843 = vmax.xlane.f32.xlu2 %v1824_v44  ;;  %v1860_v60 = vmax.f32 %v458_v56, %v1854_v58  ;;  %p1548_p0 = pnand %p1547_p13, %p1543_p7 }
  0x36   : > { %v451_v61 = vmax.f32 %v443_v57, %v1857_v59 }
  0x38   : > { %v459_v63 = vmax.f32 %v451_v61, %v1864_v62 }
  0x3a   : > { %v1872_v1 = vmax.f32 %v459_v63, %v1869_v0 }
  0x3d   : > { %845 = vmax.xlane.f32.xlu2 %v1840_v51 }
  0x45   : > { %847 = vmax.xlane.f32.xlu2 %v1860_v60 }
  0x4d   : > { %849 = vmax.xlane.f32.xlu2 %v1872_v1 }
  0x65   : > { %365 = vperm.xlu2 %1380, %v355_v2  }
  0x9e   : > { %v393_v11 = vpop.permute.xlu1 %392  ;;  %v390_v13 = vpop.permute.xlu0 %389 }
  0x9f   : > { %v401_v12 = vsub.s32 %v393_v11, %v1883_v7  ;;  %v400_v15 = vsub.s32 %v390_v13, %v1883_v7 }
  0xa1   : > { %vm529_vm0 = vcmp.eq.s32.totalorder %v401_v12, 0  ;;  %vm569_vm1 = vcmp.eq.s32.totalorder %v401_v12, 128  ;;  %vm609_vm2 = vcmp.eq.s32.totalorder %v401_v12, 256  ;;  %vm649_vm3 = vcmp.eq.s32.totalorder %v401_v12, 384 }
  0xa2   : > { %v533_v18 = vsel %vm529_vm0, %v1750_v9, 0.0  ;;  %v573_v19 = vsel %vm569_vm1, %v1753_v10, 0.0  ;;  %vm689_vm4 = vcmp.eq.s32.totalorder %v401_v12, 512  ;;  %v613_v26 = vsel %vm609_vm2, %v1759_v14, 0.0 }
  0xa3   : > { %v577_v25 = vadd.f32 %v573_v19, %v533_v18  ;;  %v653_v28 = vsel %vm649_vm3, %v1765_v17, 0.0  ;;  %vm729_vm5 = vcmp.eq.s32.totalorder %v401_v12, 640  ;;  %vm769_vm6 = vcmp.eq.s32.totalorder %v401_v12, 768 }
  0xa4   : > { %v693_v34 = vsel %vm689_vm4, %v1782_v24, 0.0  ;;  %vm528_vm7 = vcmp.eq.s32.totalorder %v400_v15, 0  ;;  %vm568_vm8 = vcmp.eq.s32.totalorder %v400_v15, 128  ;;  %vm608_vm9 = vcmp.eq.s32.totalorder %v400_v15, 256 }
  0xa5   : > { %v617_v30 = vadd.f32 %v613_v26, %v577_v25  ;;  %v532_v37 = vsel %vm528_vm7, %v1736_v4, 0.0  ;;  %v572_v38 = vsel %vm568_vm8, %v1739_v5, 0.0  ;;  %vm648_vm10 = vcmp.eq.s32.totalorder %v400_v15, 384 }
  0xa6   : > { %v399_v35 = vpop.permute.xlu1 %398  ;;  %v396_v40 = vpop.permute.xlu0 %395  ;;  %v576_v46 = vadd.f32 %v572_v38, %v532_v37  ;;  %v612_v47 = vsel %vm608_vm9, %v1742_v6, 0.0  ;;  %v733_v52 = vsel %vm729_vm5, %v1792_v29, 0.0  ;;  %v652_v53 = vsel %vm648_vm10, %v1747_v8, 0.0 }
  0xa7   : > { %v1895_v39 = vsub.s32 %v399_v35, %v1883_v7  ;;  %v657_v45 = vadd.f32 %v653_v28, %v617_v30  ;;  %vm688_vm11 = vcmp.eq.s32.totalorder %v400_v15, 512  ;;  %vm728_vm12 = vcmp.eq.s32.totalorder %v400_v15, 640 }
  0xa8   : > { %v773_v57 = vsel %vm769_vm6, %v1815_v41, 0.0  ;;  %vm809_vm13 = vcmp.eq.s32.totalorder %v401_v12, 896  ;;  %v616_v61 = vadd.f32 %v612_v47, %v576_v46  ;;  %v1904_v63 = vsub.s32 %v396_v40, %v1883_v7 }
  0xa9   : > { %v697_v56 = vadd.f32 %v693_v34, %v657_v45  ;;  %v692_v2 = vsel %vm688_vm11, %v1762_v16, 0.0  ;;  %vm531_vm14 = vcmp.eq.s32.totalorder %v1895_v39, 0  ;;  %vm571_vm15 = vcmp.eq.s32.totalorder %v1895_v39, 128 }
  0xaa   : > { %v656_v13 = vadd.f32 %v652_v53, %v616_v61  ;;  %v732_v18 = vsel %vm728_vm12, %v1779_v23, 0.0  ;;  %vm768_vm0 = vcmp.eq.s32.totalorder %v400_v15, 768  ;;  %vm808_vm1 = vcmp.eq.s32.totalorder %v400_v15, 896 }
  0xab   : > { %v737_v11 = vadd.f32 %v733_v52, %v697_v56  ;;  %v535_v19 = vsel %vm531_vm14, %v1799_v32, 0.0  ;;  %v575_v25 = vsel %vm571_vm15, %v1802_v33, 0.0  ;;  %vm611_vm2 = vcmp.eq.s32.totalorder %v1895_v39, 256 }
  0xac   : > { %v696_v28 = vadd.f32 %v692_v2, %v656_v13  ;;  %v579_v30 = vadd.f32 %v575_v25, %v535_v19  ;;  %vm651_vm3 = vcmp.eq.s32.totalorder %v1895_v39, 384  ;;  %v813_v34 = vsel %vm809_vm13, %v1831_v48, 0.0 }
  0xad   : > { %v777_v26 = vadd.f32 %v773_v57, %v737_v11  ;;  %v772_v35 = vsel %vm768_vm0, %v1788_v27, 0.0  ;;  %v615_v37 = vsel %vm611_vm2, %v1821_v43, 0.0  ;;  %vm691_vm4 = vcmp.eq.s32.totalorder %v1895_v39, 512 }
  0xae   : > { %v736_v15 = vadd.f32 %v732_v18, %v696_v28  ;;  %v619_v40 = vadd.f32 %v615_v37, %v579_v30  ;;  %v812_v45 = vsel %vm808_vm1, %v1807_v36, 0.0  ;;  %v655_v46 = vsel %vm651_vm3, %v1837_v50, 0.0 }
  0xaf   : > { %v817_v38 = vadd.f32 %v813_v34, %v777_v26  ;;  %vm731_vm5 = vcmp.eq.s32.totalorder %v1895_v39, 640  ;;  %vm530_vm6 = vcmp.eq.s32.totalorder %v1904_v63, 0  ;;  %vm771_vm7 = vcmp.eq.s32.totalorder %v1895_v39, 768 }
  0xb0   : > { %v776_v12 = vadd.f32 %v772_v35, %v736_v15  ;;  %v659_v47 = vadd.f32 %v655_v46, %v619_v40  ;;  %v534_v52 = vsel %vm530_vm6, %v1770_v20, 0.0  ;;  %v695_v53 = vsel %vm691_vm4, %v1848_v55, 0.0 }
  0xb1   : > { %897 = vadd.xlane.f32.xlu0 %v817_v38  ;;  %vm570_vm8 = vcmp.eq.s32.totalorder %v1904_v63, 128  ;;  %vm610_vm9 = vcmp.eq.s32.totalorder %v1904_v63, 256  ;;  %vm650_vm10 = vcmp.eq.s32.totalorder %v1904_v63, 384  ;;  %v735_v11 = vsel %vm731_vm5, %v1857_v59, 0.0 }
  0xb2   : > { %v816_v56 = vadd.f32 %v812_v45, %v776_v12  ;;  %v699_v57 = vadd.f32 %v695_v53, %v659_v47  ;;  %v574_v61 = vsel %vm570_vm8, %v1773_v21, 0.0  ;;  %v614_v2 = vsel %vm610_vm9, %v1776_v22, 0.0  ;;  %v1948_v47 = vpop.xlane.xlu2 %843 }
  0xb3   : > { %v578_v13 = vadd.f32 %v574_v61, %v534_v52  ;;  %vm690_vm11 = vcmp.eq.s32.totalorder %v1904_v63, 512  ;;  %vm811_vm12 = vcmp.eq.s32.totalorder %v1895_v39, 896  ;;  %v654_v19 = vsel %vm650_vm10, %v1796_v31, 0.0 }
  0xb4   : > { %895 = vadd.xlane.f32.xlu2 %v816_v56  ;;  %v739_v18 = vadd.f32 %v735_v11, %v699_v57  ;;  %v775_v25 = vsel %vm771_vm7, %v1864_v62, 0.0  ;;  %vm730_vm13 = vcmp.eq.s32.totalorder %v1904_v63, 640  ;;  %v694_v30 = vsel %vm690_vm11, %v1818_v42, 0.0  ;;  %v356_v11 = vld [vmem:[%s1879_s17 + $0x8] sm:$0xff] }
  0xb5   : > { %v618_v26 = vadd.f32 %v614_v2, %v578_v13  ;;  %v476_v34 = vsub.f32 -inf, %v1824_v44  ;;  %v815_v35 = vsel %vm811_vm12, %v1869_v0, 0.0  ;;  %vm770_vm14 = vcmp.eq.s32.totalorder %v1904_v63, 768 }
  0xb6   : > { %v779_v28 = vadd.f32 %v775_v25, %v739_v18  ;;  %v734_v15 = vsel %vm730_vm13, %v1834_v49, 0.0  ;;  %v774_v39 = vsel %vm770_vm14, %v1845_v54, 0.0  ;;  %v500_v46 = vsub.f32 %v1736_v4, %v1824_v44 }
  0xb7   : > { %v658_v37 = vadd.f32 %v654_v19, %v618_v26  ;;  %v480_v45 = vmul.f32 1.442695, %v476_v34  ;;  %vm810_vm15 = vcmp.eq.s32.totalorder %v1904_v63, 896  ;;  %v540_v57 = vsub.f32 %v1739_v5, %v1824_v44 }
  0xb8   : > { %v819_v38 = vadd.f32 %v815_v35, %v779_v28  ;;  %v814_v53 = vsel %vm810_vm15, %v1854_v58, 0.0  ;;  %v504_v56 = vmul.f32 1.442695, %v500_v46  ;;  %v479_v2 = vsub.f32 -inf, %v1872_v1 }
  0xb9   : > { %v698_v40 = vadd.f32 %v694_v30, %v658_v37  ;;  %1382 = vpow2.f32 %v480_v45  ;;  %v580_v13 = vsub.f32 %v1742_v6, %v1824_v44  ;;  %v544_v63 = vmul.f32 1.442695, %v540_v57 }
  0xba   : > { %901 = vadd.xlane.f32.xlu1 %v819_v38  ;;  %1384 = vpow2.f32 %v504_v56  ;;  %v486_v18 = vmul.f32 1.442695, %v479_v2  ;;  %v503_v19 = vsub.f32 %v1799_v32, %v1872_v1  ;;  %v1959_v26 = vpop.xlane.xlu2 %845  ;;  %v543_v30 = vsub.f32 %v1802_v33, %v1872_v1 }
  0xbb   : > { %v738_v12 = vadd.f32 %v734_v15, %v698_v40  ;;  %v584_v34 = vmul.f32 1.442695, %v580_v13  ;;  %v620_v35 = vsub.f32 %v1747_v8, %v1824_v44  ;;  %v660_v38 = vsub.f32 %v1762_v16, %v1824_v44 }
  0xbc   : > { %1386 = vpow2.f32 %v486_v18  ;;  %v510_v28 = vmul.f32 1.442695, %v503_v19  ;;  %v700_v40 = vsub.f32 %v1779_v23, %v1824_v44  ;;  %v583_v45 = vsub.f32 %v1821_v43, %v1872_v1 }
  0xbd   : > { %v778_v52 = vadd.f32 %v774_v39, %v738_v12  ;;  %1388 = vpow2.f32 %v544_v63  ;;  %v550_v39 = vmul.f32 1.442695, %v543_v30  ;;  %v624_v46 = vmul.f32 1.442695, %v620_v35 }
  0xbe   : > { %1390 = vpow2.f32 %v510_v28  ;;  %v740_v12 = vsub.f32 %v1788_v27, %v1824_v44  ;;  %v664_v56 = vmul.f32 1.442695, %v660_v38  ;;  %v477_v57 = vsub.f32 -inf, %v1840_v51 }
  0xbf   : > { %v818_v61 = vadd.f32 %v814_v53, %v778_v52  ;;  %v1383_v25 = vpop.eup %1382  ;;  %1392 = vpow2.f32 %v584_v34  ;;  %v704_v2 = vmul.f32 1.442695, %v700_v40  ;;  %v590_v13 = vmul.f32 1.442695, %v583_v45 }
  0xc0   : > { %v488_v37 = vmul.f32 0.0, %v1383_v25  ;;  %v1385_v15 = vpop.eup %1384  ;;  %1394 = vpow2.f32 %v550_v39  ;;  %v623_v63 = vsub.f32 %v1837_v50, %v1872_v1  ;;  %v501_v18 = vsub.f32 %v1750_v9, %v1840_v51 }
  0xc1   : > { %899 = vadd.xlane.f32.xlu2 %v818_v61  ;;  %1396 = vpow2.f32 %v624_v46  ;;  %v744_v19 = vmul.f32 1.442695, %v740_v12  ;;  %v663_v35 = vsub.f32 %v1848_v55, %v1872_v1  ;;  %v478_v39 = vsub.f32 -inf, %v1860_v60 }
  0xc2   : > { %v1387_v52 = vpop.eup %1386  ;;  %v512_v53 = vadd.f32 %v1385_v15, %v488_v37  ;;  %v1980_v30 = vpop.xlane.xlu2 %847  ;;  %1398 = vpow2.f32 %v664_v56  ;;  %v482_v37 = vmul.f32 1.442695, %v477_v57  ;;  %v357_v15 = vld [vmem:[%s1879_s17 + $0x10] sm:$0xff]  ;;  %v630_v45 = vmul.f32 1.442695, %v623_v63 }
  0xc3   : > { %v1389_v61 = vpop.eup %1388  ;;  %v491_v25 = vmul.f32 0.0, %v1387_v52  ;;  %1400 = vpow2.f32 %v704_v2  ;;  %v506_v46 = vmul.f32 1.442695, %v501_v18  ;;  %v541_v52 = vsub.f32 %v1753_v10, %v1840_v51 }
  0xc4   : > { %v1391_v28 = vpop.eup %1390  ;;  %v552_v34 = vadd.f32 %v1389_v61, %v512_v53  ;;  %1402 = vpow2.f32 %v590_v13  ;;  %v502_v53 = vsub.f32 %v1770_v20, %v1860_v60  ;;  %v670_v61 = vmul.f32 1.442695, %v663_v35 }
  0xc5   : > { %368 = vperm.xlu0 %1378, %v356_v11   ;;  %v780_v11 = vsub.f32 %v1807_v36, %v1824_v44  ;;  %v1393_v38 = vpop.eup %1392  ;;  %1404 = vpow2.f32 %v744_v19  ;;  %v515_v12 = vadd.f32 %v1391_v28, %v491_v25  ;;  %v542_v2 = vsub.f32 %v1773_v21, %v1860_v60  ;;  %v358_v28 = vld [vmem:[%s1879_s17 + $0x18] sm:$0xff] }
  0xc6   : > { %v1395_v56 = vpop.eup %1394  ;;  %v592_v57 = vadd.f32 %v1393_v38, %v552_v34  ;;  %1406 = vpow2.f32 %v482_v37  ;;  %v484_v13 = vmul.f32 1.442695, %v478_v39  ;;  %v582_v63 = vsub.f32 %v1776_v22, %v1860_v60 }
  0xc7   : > { %v784_v40 = vmul.f32 1.442695, %v780_v11  ;;  %v1397_v11 = vpop.eup %1396  ;;  %v703_v20 = vsub.f32 %v1857_v59, %v1872_v1  ;;  %v508_v19 = vmul.f32 1.442695, %v502_v53  ;;  %v555_v34 = vadd.f32 %v1395_v56, %v515_v12 }
  0xc8   : > { %v1399_v18 = vpop.eup %1398  ;;  %v548_v35 = vmul.f32 1.442695, %v542_v2  ;;  %v622_v21 = vsub.f32 %v1796_v31, %v1860_v60  ;;  %v632_v38 = vadd.f32 %v1397_v11, %v592_v57  ;;  %v581_v22 = vsub.f32 %v1759_v14, %v1840_v51 }
  0xc9   : > { %1408 = vpow2.f32 %v784_v40  ;;  %v1401_v25 = vpop.eup %1400  ;;  %v588_v39 = vmul.f32 1.442695, %v582_v63  ;;  %v710_v12 = vmul.f32 1.442695, %v703_v20  ;;  %v743_v31 = vsub.f32 %v1864_v62, %v1872_v1 }
  0xca   : > { %1410 = vpow2.f32 %v630_v45  ;;  %v1403_v37 = vpop.eup %1402  ;;  %v662_v45 = vsub.f32 %v1818_v42, %v1860_v60  ;;  %v672_v11 = vadd.f32 %v1399_v18, %v632_v38  ;;  %v586_v42 = vmul.f32 1.442695, %v581_v22 }
  0xcb   : > { %1412 = vpow2.f32 %v506_v46  ;;  %v1405_v40 = vpop.eup %1404  ;;  %v2003_v46 = vpop.xlane.xlu2 %849  ;;  %v595_v57 = vadd.f32 %v1403_v37, %v555_v34  ;;  %v783_v34 = vsub.f32 %v1869_v0, %v1872_v1  ;;  %v661_v37 = vsub.f32 %v1782_v24, %v1840_v51 }
  0xcc   : > { %1414 = vpow2.f32 %v670_v61  ;;  %v1407_v53 = vpop.eup %1406  ;;  %v628_v61 = vmul.f32 1.442695, %v622_v21 }
  0xcd   : > { %1416 = vpow2.f32 %v484_v13  ;;  %v621_v13 = vsub.f32 %v1765_v17, %v1840_v51  ;;  %v489_v20 = vmul.f32 0.0, %v1407_v53 }
  0xce   : > { %1418 = vpow2.f32 %v508_v19  ;;  %v702_v19 = vsub.f32 %v1834_v49, %v1860_v60 }
  0xcf   : > { %v2007_v56 = vpop.eup %1408  ;;  %1420 = vpow2.f32 %v548_v35  ;;  %v626_v22 = vmul.f32 1.442695, %v621_v13 }
  0xd0   : > { %v1411_v2 = vpop.eup %1410  ;;  %v708_v53 = vmul.f32 1.442695, %v702_v19 }
  0xd1   : > { %v1413_v63 = vpop.eup %1412  ;;  %v635_v21 = vadd.f32 %v1411_v2, %v595_v57  ;;  %v790_v57 = vmul.f32 1.442695, %v783_v34 }
  0xd2   : > { %v1415_v3 = vpop.eup %1414  ;;  %v513_v49 = vadd.f32 %v1413_v63, %v489_v20  ;;  %v701_v63 = vsub.f32 %v1792_v29, %v1840_v51 }
  0xd3   : > { %371 = vperm.xlu1 %1379, %v357_v15   ;;  %v546_v15 = vmul.f32 1.442695, %v541_v52  ;;  %v855_v52 = vsub.f32 %v1824_v44, %v1948_v47  ;;  %v750_v44 = vmul.f32 1.442695, %v743_v31  ;;  %v1417_v35 = vpop.eup %1416  ;;  %v366_v13 = vpop.permute.xlu2 %365 }
  0xd4   : > { %v1419_v38 = vpop.eup %1418 }
  0xd5   : > { %1422 = vpow2.f32 %v546_v15  ;;  %v859_v18 = vmul.f32 1.442695, %v855_v52  ;;  %v712_v15 = vadd.f32 %v1401_v25, %v672_v11  ;;  %v858_v52 = vsub.f32 %v1872_v1, %v2003_v46 }
  0xd6   : > { %1424 = vpow2.f32 %v588_v39  ;;  %v490_v39 = vmul.f32 0.0, %v1417_v35  ;;  %v675_v25 = vadd.f32 %v1415_v3, %v635_v21  ;;  %v666_v11 = vmul.f32 1.442695, %v661_v37 }
  0xd7   : > { %1426 = vpow2.f32 %v710_v12  ;;  %v742_v12 = vsub.f32 %v1845_v54, %v1860_v60  ;;  %v752_v35 = vadd.f32 %v1405_v40, %v712_v15  ;;  %v782_v1 = vsub.f32 %v1854_v58, %v1860_v60 }
  0xd8   : > { %1428 = vpow2.f32 %v628_v61  ;;  %v514_v2 = vadd.f32 %v1419_v38, %v490_v39  ;;  %v865_v34 = vmul.f32 1.442695, %v858_v52  ;;  %v857_v40 = vsub.f32 %v1860_v60, %v1980_v30 }
  0xd9   : > { %374 = vperm.xlu2 %1380, %v358_v28   ;;  %v668_v28 = vmul.f32 1.442695, %v662_v45  ;;  %1430 = vpow2.f32 %v586_v42  ;;  %v1421_v45 = vpop.eup %1420  ;;  %v748_v19 = vmul.f32 1.442695, %v742_v12  ;;  %v2030_v21 = vsub.s32 %v366_v13, %v1883_v7 }
  0xda   : > { %v554_v20 = vadd.f32 %v1421_v45, %v514_v2  ;;  %v706_v15 = vmul.f32 1.442695, %v701_v63  ;;  %v792_v45 = vadd.f32 %v2007_v56, %v752_v35 }
  0xdb   : > { %1432 = vpow2.f32 %v668_v28  ;;  %v1423_v31 = vpop.eup %1422  ;;  %vm516_vm0 = vcmp.eq.s32.totalorder %v2030_v21, 0  ;;  %vm556_vm1 = vcmp.eq.s32.totalorder %v2030_v21, 128  ;;  %vm596_vm2 = vcmp.eq.s32.totalorder %v2030_v21, 256 }
  0xdc   : > { %1434 = vpow2.f32 %v750_v44  ;;  %v1425_v61 = vpop.eup %1424  ;;  %v553_v28 = vadd.f32 %v1423_v31, %v513_v49  ;;  %v520_v35 = vsel %vm516_vm0, %v1736_v4, 0.0  ;;  %v560_v63 = vsel %vm556_vm1, %v1739_v5, 0.0 }
  0xdd   : > { %1436 = vpow2.f32 %v859_v18  ;;  %v1427_v42 = vpop.eup %1426  ;;  %v594_v3 = vadd.f32 %v1425_v61, %v554_v20  ;;  %v781_v61 = vsub.f32 %v1831_v48, %v1840_v51  ;;  %v600_v4 = vsel %vm596_vm2, %v1742_v6, 0.0 }
  0xde   : > { %1438 = vpow2.f32 %v626_v22  ;;  %v1429_v54 = vpop.eup %1428  ;;  %v715_v37 = vadd.f32 %v1427_v42, %v675_v25  ;;  %v741_v22 = vsub.f32 %v1815_v41, %v1840_v51  ;;  %v863_v25 = vmul.f32 1.442695, %v857_v40 }
  0xdf   : > { %1440 = vpow2.f32 %v708_v53  ;;  %v1431_v44 = vpop.eup %1430  ;;  %v634_v39 = vadd.f32 %v1429_v54, %v594_v3  ;;  %v788_v53 = vmul.f32 1.442695, %v782_v1  ;;  %v786_v1 = vmul.f32 1.442695, %v781_v61 }
  0xe0   : > { %1442 = vpow2.f32 %v790_v57  ;;  %v593_v49 = vadd.f32 %v1431_v44, %v553_v28  ;;  %v746_v2 = vmul.f32 1.442695, %v741_v22  ;;  %vm636_vm3 = vcmp.eq.s32.totalorder %v2030_v21, 384 }
  0xe1   : > { %v1433_v18 = vpop.eup %1432  ;;  %1444 = vpow2.f32 %v666_v11  ;;  %vm676_vm4 = vcmp.eq.s32.totalorder %v2030_v21, 512  ;;  %vm716_vm5 = vcmp.eq.s32.totalorder %v2030_v21, 640  ;;  %vm756_vm6 = vcmp.eq.s32.totalorder %v2030_v21, 768 }
  0xe2   : > { %v1435_v38 = vpop.eup %1434  ;;  %1446 = vpow2.f32 %v748_v19  ;;  %v674_v60 = vadd.f32 %v1433_v18, %v634_v39  ;;  %v856_v19 = vsub.f32 %v1840_v51, %v1959_v26  ;;  %v640_v51 = vsel %vm636_vm3, %v1747_v8, 0.0 }
  0xe3   : > { %v1437_v58 = vpop.eup %1436  ;;  %1448 = vpow2.f32 %v865_v34  ;;  %v755_v52 = vadd.f32 %v1435_v38, %v715_v37  ;;  %v564_v34 = vadd.f32 %v560_v63, %v520_v35  ;;  %v760_v61 = vsel %vm756_vm6, %v1788_v27, 0.0 }
  0xe4   : > { %v1439_v12 = vpop.eup %1438  ;;  %1450 = vpow2.f32 %v706_v15  ;;  %v867_v56 = vmul.f32 %v1437_v58, %v792_v45  ;;  %v861_v37 = vmul.f32 1.442695, %v856_v19  ;;  %vm796_vm7 = vcmp.eq.s32.totalorder %v2030_v21, 896 }
  0xe5   : > { %v1441_v31 = vpop.eup %1440  ;;  %v633_v11 = vadd.f32 %v1439_v12, %v593_v49  ;;  %1452 = vpow2.f32 %v788_v53  ;;  %v604_v15 = vadd.f32 %v600_v4, %v564_v34  ;;  %v680_v12 = vsel %vm676_vm4, %v1762_v16, 0.0 }
  0xe6   : > { %v1443_v57 = vpop.eup %1442  ;;  %v714_v13 = vadd.f32 %v1441_v31, %v674_v60  ;;  %1454 = vpow2.f32 %v746_v2  ;;  %v800_v16 = vsel %vm796_vm7, %v1807_v36, 0.0 }
  0xe7   : > { %v1445_v42 = vpop.eup %1444  ;;  %v795_v54 = vadd.f32 %v1443_v57, %v755_v52  ;;  %1456 = vpow2.f32 %v863_v25  ;;  %v644_v49 = vadd.f32 %v640_v51, %v604_v15  ;;  %v720_v57 = vsel %vm716_vm5, %v1779_v23, 0.0 }
  0xe8   : > { %v1447_v20 = vpop.eup %1446  ;;  %v673_v44 = vadd.f32 %v1445_v42, %v633_v11  ;;  %1458 = vpow2.f32 %v786_v1  ;;  %v2212_v11 = vlaneseq  ;;  %v933_v1 = vld [vmem:[#allocation6] sm:$0x1] }
  0xe9   : > { %v1449_v28 = vpop.eup %1448  ;;  %v754_v18 = vadd.f32 %v1447_v20, %v714_v13  ;;  %1460 = vpow2.f32 %v861_v37  ;;  %v684_v31 = vadd.f32 %v680_v12, %v644_v49  ;;  %v983_v37 = vsub.f32 1.0, %v933_v1 }
  0xea   : > { %v1451_v3 = vpop.eup %1450  ;;  %v870_v5 = vmul.f32 %v1449_v28, %v795_v54  ;;  %v2056_v42 = vshrl.u32 %v2212_v11, 7 }
  0xeb   : > { %v1453_v40 = vpop.eup %1452  ;;  %v713_v38 = vadd.f32 %v1451_v3, %v673_v44  ;;  %v724_v2 = vadd.f32 %v720_v57, %v684_v31 }
  0xec   : > { %v1455_v22 = vpop.eup %1454  ;;  %v794_v39 = vadd.f32 %v1453_v40, %v754_v18  ;;  %vm937_vm8 = vcmp.ge.s32.totalorder %v2056_v42, 4 }
  0xed   : > { %v1457_v58 = vpop.eup %1456  ;;  %v753_v45 = vadd.f32 %v1455_v22, %v713_v38  ;;  %v764_v25 = vadd.f32 %v760_v61, %v724_v2 }
  0xee   : > { %v1459_v6 = vpop.eup %1458  ;;  %v869_v53 = vmul.f32 %v1457_v58, %v794_v39 }
  0xef   : > { %871 = vadd.xlane.f32.xlu0 %v867_v56  ;;  %v793_v60 = vadd.f32 %v1459_v6, %v753_v45  ;;  %v1461_v52 = vpop.eup %1460  ;;  %v804_v56 = vadd.f32 %v800_v16, %v764_v25 }
  0xf1   : > { %v868_v8 = vmul.f32 %v1461_v52, %v793_v60  ;;  %v2076_v60 = vperm.slane %v983_v37, 0 }
  0xf7   : > { %877 = vadd.xlane.f32.xlu0 %v870_v5 }
  0xfd   : > { %875 = vadd.xlane.f32.xlu1 %v869_v53 }
 0x102   : > { %873 = vadd.xlane.f32.xlu2 %v868_v8 }
 0x10a   : > { %883 = vadd.xlane.f32.xlu2 %v804_v56 }
 0x124   : > { %v898_v23 = vpop.xlane.xlu0 %897 }
 0x127   : > { %v896_v13 = vpop.xlane.xlu2 %895 }
 0x128   : > { %v941_v35 = vsel %vm937_vm8, %v896_v13, -inf }
 0x129   : > { %v943_v63 = vmax.f32 %v941_v35, %v898_v23 }
 0x12b   : > { %v944_v27 = vrot.slane %v943_v63, 4 }
 0x12d   : > { %v945_v20 = vmax.f32 %v943_v63, %v944_v27  ;;  %v902_v19 = vpop.xlane.xlu1 %901 }
 0x12f   : > { %v946_v54 = vrot.slane %v945_v20, 2 }
 0x131   : > { %v947_v21 = vmax.f32 %v945_v20, %v946_v54 }
 0x133   : > { %v948_v28 = vrot.slane %v947_v21, 1 }
 0x134   : > { %v900_v36 = vpop.xlane.xlu2 %899 }
 0x135   : > { %v949_v44 = vmax.f32 %v947_v21, %v948_v28  ;;  %v1049_v34 = vsel %vm937_vm8, %v900_v36, -inf }
 0x136   : > { %v1051_v3 = vmax.f32 %v1049_v34, %v902_v19 }
 0x137   : > { %v369_v18 = vpop.permute.xlu0 %368  ;;  %v2063_v4 = vsub.f32 %v896_v13, %v949_v44  ;;  %v951_v40 = vsub.f32 %v898_v23, %v949_v44 }
 0x138   : > { %v2066_v5 = vsub.s32 %v369_v18, %v1883_v7  ;;  %v1052_v38 = vrot.slane %v1051_v3, 4 }
 0x139   : > { %v952_v15 = vmul.f32 1.442695, %v2063_v4  ;;  %v954_v22 = vmul.f32 1.442695, %v951_v40  ;;  %v974_v39 = vsub.f32 0.0, %v2063_v4 }
 0x13a   : > { %vm517_vm9 = vcmp.eq.s32.totalorder %v2066_v5, 0  ;;  %v1053_v51 = vmax.f32 %v1051_v3, %v1052_v38  ;;  %vm557_vm10 = vcmp.eq.s32.totalorder %v2066_v5, 128  ;;  %vm597_vm11 = vcmp.eq.s32.totalorder %v2066_v5, 256 }
 0x13b   : > { %v521_v58 = vsel %vm517_vm9, %v1750_v9, 0.0  ;;  %1462 = vpow2.f32 %v952_v15  ;;  %v976_v45 = vmul.f32 1.442695, %v974_v39  ;;  %v561_v49 = vsel %vm557_vm10, %v1753_v10, 0.0 }
 0x13c   : > { %1464 = vpow2.f32 %v954_v22  ;;  %v1054_v6 = vrot.slane %v1053_v51, 2  ;;  %v375_v53 = vpop.permute.xlu2 %374  ;;  %v565_v12 = vadd.f32 %v561_v49, %v521_v58  ;;  %vm637_vm12 = vcmp.eq.s32.totalorder %v2066_v5, 384 }
 0x13d   : > { %v379_v31 = vsub.s32 %v375_v53, %v1883_v7  ;;  %v601_v9 = vsel %vm597_vm11, %v1759_v14, 0.0  ;;  %vm677_vm13 = vcmp.eq.s32.totalorder %v2066_v5, 512  ;;  %1466 = vpow2.f32 %v976_v45  ;;  %v1486_v53 = vld [vmem:[%s1722_s12 + $0x80] sm:$0xff] }
 0x13e   : > { %v1055_v52 = vmax.f32 %v1053_v51, %v1054_v6  ;;  %v605_v57 = vadd.f32 %v601_v9, %v565_v12  ;;  %v641_v8 = vsel %vm637_vm12, %v1765_v17, 0.0  ;;  %v681_v25 = vsel %vm677_vm13, %v1782_v24, 0.0  ;;  %v1487_v9 = vld [vmem:[%s1722_s12 + $0x88] sm:$0xff] }
 0x13f   : > { %vm519_vm14 = vcmp.eq.s32.totalorder %v379_v31, 0  ;;  %vm559_vm15 = vcmp.eq.s32.totalorder %v379_v31, 128  ;;  %vm599_vm0 = vcmp.eq.s32.totalorder %v379_v31, 256  ;;  %vm639_vm1 = vcmp.eq.s32.totalorder %v379_v31, 384 }
 0x140   : > { %v1056_v10 = vrot.slane %v1055_v52, 1  ;;  %v523_v2 = vsel %vm519_vm14, %v1799_v32, 0.0  ;;  %v563_v61 = vsel %vm559_vm15, %v1802_v33, 0.0  ;;  %v603_v56 = vsel %vm599_vm0, %v1821_v43, 0.0 }
 0x141   : > { %v1463_v16 = vpop.eup %1462  ;;  %v567_v14 = vadd.f32 %v563_v61, %v523_v2  ;;  %vm679_vm2 = vcmp.eq.s32.totalorder %v379_v31, 512  ;;  %vm717_vm3 = vcmp.eq.s32.totalorder %v2066_v5, 640  ;;  %v643_v13 = vsel %vm639_vm1, %v1837_v50, 0.0 }
 0x142   : > { %v1465_v11 = vpop.eup %1464  ;;  %v956_v17 = vsel %vm937_vm8, %v1463_v16, 0.0  ;;  %v1057_v23 = vmax.f32 %v1055_v52, %v1056_v10  ;;  %vm719_vm4 = vcmp.eq.s32.totalorder %v379_v31, 640  ;;  %v683_v20 = vsel %vm679_vm2, %v1848_v55, 0.0 }
 0x143   : > { %v958_v32 = vadd.f32 %v1465_v11, %v956_v17  ;;  %v965_v33 = vmul.f32 %v956_v17, %v2063_v4  ;;  %v966_v35 = vmul.f32 %v1465_v11, %v951_v40  ;;  %v607_v24 = vadd.f32 %v603_v56, %v567_v14  ;;  %v2091_v63 = vpop.eup %1466 }
 0x144   : > { %v2093_v27 = vsub.f32 %v900_v36, %v1057_v23  ;;  %v1059_v43 = vsub.f32 %v902_v19, %v1057_v23  ;;  %vm759_vm5 = vcmp.eq.s32.totalorder %v379_v31, 768  ;;  %vm799_vm6 = vcmp.eq.s32.totalorder %v379_v31, 896 }
 0x145   : > { %v959_v54 = vrot.slane %v958_v32, 4  ;;  %v967_v21 = vadd.f32 %v966_v35, %v965_v33  ;;  %v372_v28 = vpop.permute.xlu1 %371  ;;  %v647_v1 = vadd.f32 %v643_v13, %v607_v24  ;;  %v723_v34 = vsel %vm719_vm4, %v1857_v59, 0.0  ;;  %v1488_v13 = vld [vmem:[%s1722_s12 + $0x90] sm:$0xff] }
 0x146   : > { %v1060_v50 = vmul.f32 1.442695, %v2093_v27  ;;  %v1062_v44 = vmul.f32 1.442695, %v1059_v43  ;;  %v763_v3 = vsel %vm759_vm5, %v1864_v62, 0.0  ;;  %v1082_v19 = vsub.f32 0.0, %v2093_v27 }
 0x147   : > { %v960_v18 = vadd.f32 %v959_v54, %v958_v32  ;;  %v968_v36 = vrot.slane %v967_v21, 4  ;;  %v687_v40 = vadd.f32 %v683_v20, %v647_v1  ;;  %v2102_v55 = vsub.s32 %v372_v28, %v1883_v7  ;;  %v1381_v54 = vld [vmem:[#allocation6] ss:$0 sm:$0xff] }
 0x148   : > { %1468 = vpow2.f32 %v1060_v50  ;;  %v803_v37 = vsel %vm799_vm6, %v1869_v0, 0.0  ;;  %v645_v38 = vadd.f32 %v641_v8, %v605_v57  ;;  %v721_v62 = vsel %vm717_vm3, %v1792_v29, 0.0  ;;  %v1489_v28 = vld [vmem:[%s1722_s12 + $0x98] sm:$0xff] }
 0x149   : > { %v961_v15 = vrot.slane %v960_v18, 2  ;;  %v969_v22 = vadd.f32 %v968_v36, %v967_v21  ;;  %1470 = vpow2.f32 %v1062_v44  ;;  %v727_v39 = vadd.f32 %v723_v34, %v687_v40  ;;  %v1490_v36 = vld [vmem:[%s1722_s12 + $0xa0] sm:$0xff] }
 0x14a   : > { %v685_v59 = vadd.f32 %v681_v25, %v645_v38  ;;  %vm757_vm7 = vcmp.eq.s32.totalorder %v2066_v5, 768  ;;  %vm797_vm9 = vcmp.eq.s32.totalorder %v2066_v5, 896  ;;  %vm518_vm10 = vcmp.eq.s32.totalorder %v2102_v55, 0 }
 0x14b   : > { %v962_v51 = vadd.f32 %v961_v15, %v960_v18  ;;  %v970_v7 = vrot.slane %v969_v22, 2  ;;  %v767_v58 = vadd.f32 %v763_v3, %v727_v39  ;;  %v761_v0 = vsel %vm757_vm7, %v1815_v41, 0.0  ;;  %v1491_v39 = vld [vmem:[%s1722_s12 + $0xa8] sm:$0xff] }
 0x14c   : > { %v725_v45 = vadd.f32 %v721_v62, %v685_v59  ;;  %v801_v49 = vsel %vm797_vm9, %v1831_v48, 0.0  ;;  %vm558_vm11 = vcmp.eq.s32.totalorder %v2102_v55, 128  ;;  %v522_v12 = vsel %vm518_vm10, %v1486_v53, 0.0  ;;  %v929_v48 = vld [vmem:[%s2115_s4] sm:$0xff] }
 0x14d   : > { %v963_v29 = vrot.slane %v962_v51, 1  ;;  %v971_v5 = vadd.f32 %v970_v7, %v969_v22  ;;  %v807_v6 = vadd.f32 %v803_v37, %v767_v58  ;;  %v562_v52 = vsel %vm558_vm11, %v1487_v9, 0.0 }
 0x14e   : > { %v1469_v31 = vpop.eup %1468  ;;  %v765_v41 = vadd.f32 %v761_v0, %v725_v45  ;;  %vm598_vm12 = vcmp.eq.s32.totalorder %v2102_v55, 256  ;;  %vm638_vm13 = vcmp.eq.s32.totalorder %v2102_v55, 384  ;;  %v566_v61 = vadd.f32 %v562_v52, %v522_v12  ;;  %v931_v52 = vld [vmem:[%s2115_s4 + $0x10] sm:$0xff] }
 0x14f   : > { %v1471_v57 = vpop.eup %1470  ;;  %v964_v8 = vadd.f32 %v963_v29, %v962_v51  ;;  %v972_v10 = vrot.slane %v971_v5, 1  ;;  %v1064_v2 = vsel %vm937_vm8, %v1469_v31, 0.0  ;;  %889 = vadd.xlane.f32.xlu2 %v807_v6  ;;  %v602_v32 = vsel %vm598_vm12, %v1488_v13, 0.0  ;;  %v1493_v29 = vld [vmem:[%s1722_s12 + $0xb8] sm:$0xff] }
 0x150   : > { %v1066_v25 = vadd.f32 %v1471_v57, %v1064_v2  ;;  %v1073_v16 = vmul.f32 %v1064_v2, %v2093_v27  ;;  %v1074_v14 = vmul.f32 %v1471_v57, %v1059_v43  ;;  %v805_v56 = vadd.f32 %v801_v49, %v765_v41 }
 0x151   : > { %v973_v11 = vadd.f32 %v972_v10, %v971_v5  ;;  %v980_v17 = vmul.f32 0.083333336, %v964_v8  ;;  %v998_v23 = vmul.f32 %v964_v8, %v2063_v4  ;;  %v987_v33 = vmul.f32 %v2076_v60, %v929_v48 }
 0x152   : > { %v1067_v35 = vrot.slane %v1066_v25, 4  ;;  %v1075_v24 = vadd.f32 %v1074_v14, %v1073_v16  ;;  %885 = vadd.xlane.f32.xlu1 %v805_v56  ;;  %v606_v20 = vadd.f32 %v602_v32, %v566_v61  ;;  %v642_v1 = vsel %vm638_vm13, %v1489_v28, 0.0 }
 0x153   : > { %v981_v21 = vmul.f32 %v2091_v63, %v980_v17  ;;  %v1000_v43 = vsub.f32 %v973_v11, %v998_v23  ;;  %vm678_vm8 = vcmp.eq.s32.totalorder %v2102_v55, 512  ;;  %vm718_vm14 = vcmp.eq.s32.totalorder %v2102_v55, 640 }
 0x154   : > { %v1068_v4 = vadd.f32 %v1067_v35, %v1066_v25  ;;  %v1076_v50 = vrot.slane %v1075_v24, 4  ;;  %v646_v44 = vadd.f32 %v642_v1, %v606_v20  ;;  %v1084_v18 = vmul.f32 1.442695, %v1082_v19  ;;  %v1492_v19 = vld [vmem:[%s1722_s12 + $0xb0] sm:$0xff] }
 0x155   : > { %v989_v34 = vadd.f32 1e-06, %v981_v21  ;;  %v1002_v3 = vmul.f32 %v2091_v63, %v1000_v43  ;;  %v682_v40 = vsel %vm678_vm8, %v1490_v36, 0.0  ;;  %vm758_vm15 = vcmp.eq.s32.totalorder %v2102_v55, 768 }
 0x156   : > { %v1069_v37 = vrot.slane %v1068_v4, 2  ;;  %v1077_v38 = vadd.f32 %v1076_v50, %v1075_v24  ;;  %v686_v15 = vadd.f32 %v682_v40, %v646_v44  ;;  %v722_v59 = vsel %vm718_vm14, %v1491_v39, 0.0 }
 0x157   : > { %v994_v22 = vmul.f32 %v1381_v54, %v989_v34  ;;  %vm798_vm0 = vcmp.eq.s32.totalorder %v2102_v55, 896  ;;  %1472 = vpow2.f32 %v1084_v18  ;;  %v762_v58 = vsel %vm758_vm15, %v1492_v19, 0.0 }
 0x158   : > { %v1070_v62 = vadd.f32 %v1069_v37, %v1068_v4  ;;  %v1078_v51 = vrot.slane %v1077_v38, 2  ;;  %v726_v7 = vadd.f32 %v722_v59, %v686_v15  ;;  %v802_v5 = vsel %vm798_vm0, %v1493_v29, 0.0 }
 0x159   : > { %v996_v63 = vadd.f32 %v994_v22, %v987_v33  ;;  %v1091_v10 = vmul.f32 %v2076_v60, %v931_v52  ;;  %v1004_v32 = vmul.f32 0.083333336, %v1002_v3  ;;  %vm939_vm5 = vcmp.lt.s32.totalorder %v2056_v42, 4 }
 0x15a   : > { %v1071_v0 = vrot.slane %v1070_v62, 1  ;;  %v1079_v45 = vadd.f32 %v1078_v51, %v1077_v38  ;;  %v766_v49 = vadd.f32 %v762_v58, %v726_v7  ;;  %vm1038_vm6 = vcmask 7168  }
 0x15b   : > { %1474 = vrcp.f32 %v996_v63  ;;  %v1017_v56 = vand.u32 2147483648, %v996_v63  ;;  %v1015_v17 = vand.u32 2147483647, %v996_v63  ;;  %vm1011_vm2 = vweird.f32 %v996_v63 }
 0x15c   : > { %v1072_v6 = vadd.f32 %v1071_v0, %v1070_v62  ;;  %v1080_v53 = vrot.slane %v1079_v45, 1  ;;  %v806_v12 = vadd.f32 %v802_v5, %v766_v49 }
 0x15d   : > { %v1473_v55 = vpop.eup %1472  ;;  %vm1016_vm4 = vcmp.eq.f32.partialorder %v1015_v17, 8.507059e+37 }
 0x15e   : > { %v1081_v31 = vadd.f32 %v1080_v53, %v1079_v45  ;;  %v1088_v41 = vmul.f32 0.083333336, %v1072_v6  ;;  %v1099_v9 = vmul.f32 %v1072_v6, %v2093_v27  ;;  %887 = vadd.xlane.f32.xlu0 %v806_v12  ;;  %v1018_v27 = vor.u32 1.1754944e-38, %v1017_v56 }
 0x160   : > { %v1089_v57 = vmul.f32 %v1473_v55, %v1088_v41  ;;  %v1101_v48 = vsub.f32 %v1081_v31, %v1099_v9 }
 0x161   : > { %v1475_v8 = vpop.eup %1474 }
 0x162   : > { %v1007_v2 = vmul.f32 %v1475_v8, %v996_v63  ;;  %v1093_v61 = vadd.f32 1e-06, %v1089_v57  ;;  %v1103_v25 = vmul.f32 %v1473_v55, %v1101_v48  ;;  %vm1012_vm1 = vweird.f32 %v1475_v8  ;;  %v872_v49 = vpop.xlane.xlu0 %871 }
 0x163   : > { %vm1013_vm3 = vmor %vm1011_vm2, %vm1012_vm1 }
 0x164   : > { %v1008_v16 = vsub.f32 1.0, %v1007_v2  ;;  %v1095_v14 = vmul.f32 %v1381_v54, %v1093_v61  ;;  %v1105_v3 = vmul.f32 0.083333336, %v1103_v25 }
 0x166   : > { %v1009_v11 = vmul.f32 %v1475_v8, %v1008_v16  ;;  %v1097_v23 = vadd.f32 %v1095_v14, %v1091_v10 }
 0x168   : > { %v1010_v13 = vadd.f32 %v1475_v8, %v1009_v11  ;;  %1476 = vrcp.f32 %v1097_v23  ;;  %v1118_v28 = vand.u32 2147483648, %v1097_v23  ;;  %v1116_v50 = vand.u32 2147483647, %v1097_v23 }
 0x169   : > { %vm1112_vm9 = vweird.f32 %v1097_v23 }
 0x16a   : > { %v1014_v33 = vsel %vm1013_vm3, %v1475_v8, %v1010_v13  ;;  %v1119_v34 = vor.u32 1.1754944e-38, %v1118_v28  ;;  %vm1117_vm11 = vcmp.eq.f32.partialorder %v1116_v50, 8.507059e+37  ;;  %v878_v6 = vpop.xlane.xlu0 %877 }
 0x16b   : > { %v1019_v60 = vsel %vm1016_vm4, %v1018_v27, %v1014_v33 }
 0x16c   : > { %v1020_v35 = vmul.f32 %v1019_v60, %v1004_v32 }
 0x16e   : > { %v1477_v24 = vpop.eup %1476  ;;  %v1036_v20 = vsel %vm939_vm5, %v1020_v35, 0.0 }
 0x16f   : > { %v1108_v54 = vmul.f32 %v1477_v24, %v1097_v23  ;;  %v1039_v21 = vsel %vm1038_vm6, %v1036_v20, 0.0  ;;  %vm1113_vm7 = vweird.f32 %v1477_v24 }
 0x170   : > { %v1042_v1 = vrot.slane %v1039_v21, 4  ;;  %vm1114_vm10 = vmor %vm1112_vm9, %vm1113_vm7  ;;  %v876_v5 = vpop.xlane.xlu1 %875 }
 0x171   : > { %v1109_v43 = vsub.f32 1.0, %v1108_v54 }
 0x172   : > { %v1043_v36 = vadd.f32 %v1042_v1, %v1039_v21 }
 0x173   : > { %v1110_v4 = vmul.f32 %v1477_v24, %v1109_v43 }
 0x174   : > { %v1044_v38 = vrot.slane %v1043_v36, 2 }
 0x175   : > { %v1111_v44 = vadd.f32 %v1477_v24, %v1110_v4  ;;  %v874_v29 = vpop.xlane.xlu2 %873 }
 0x176   : > { %v1045_v59 = vadd.f32 %v1044_v38, %v1043_v36  ;;  %1478 = vlog2.f32 %v874_v29 }
 0x177   : > { %v1115_v18 = vsel %vm1114_vm10, %v1477_v24, %v1111_v44  ;;  %1480 = vlog2.f32 %v872_v49 }
 0x178   : > { %v1120_v40 = vsel %vm1117_vm11, %v1119_v34, %v1115_v18  ;;  %v1046_v7 = vrot.slane %v1045_v59, 1  ;;  %1482 = vlog2.f32 %v876_v5 }
 0x179   : > { %v1121_v37 = vmul.f32 %v1120_v40, %v1105_v3  ;;  %1484 = vlog2.f32 %v878_v6 }
 0x17a   : > { %v1047_v58 = vadd.f32 %v1046_v7, %v1045_v59 }
 0x17b   : > { %v1137_v15 = vsel %vm939_vm5, %v1121_v37, 0.0 }
 0x17c   : > { %v1139_v22 = vsel %vm1038_vm6, %v1137_v15, 0.0  ;;  %v1479_v42 = vpop.eup %1478 }
 0x17d   : > { %v1142_v39 = vrot.slane %v1139_v22, 4  ;;  %v1481_v53 = vpop.eup %1480  ;;  %v906_v12 = vmul.f32 0.6931472, %v1479_v42  ;;  %v884_v41 = vpop.xlane.xlu2 %883 }
 0x17e   : > { %v1483_v31 = vpop.eup %1482  ;;  %v904_v9 = vmul.f32 0.6931472, %v1481_v53 }
 0x17f   : > { %v1143_v62 = vadd.f32 %v1142_v39, %v1139_v22  ;;  %v1485_v55 = vpop.eup %1484  ;;  %v908_v57 = vmul.f32 0.6931472, %v1483_v31  ;;  %v912_v48 = vadd.f32 %v906_v12, %v1959_v26 }
 0x180   : > { %v910_v8 = vmul.f32 0.6931472, %v1485_v55  ;;  %v911_v10 = vadd.f32 %v904_v9, %v1948_v47 }
 0x181   : > { %v1144_v51 = vrot.slane %v1143_v62, 2  ;;  %v913_v25 = vadd.f32 %v908_v57, %v1980_v30 }
 0x182   : > { %v915_v61 = vsub.f32 %v911_v10, %v884_v41  ;;  %v914_v56 = vadd.f32 %v910_v8, %v2003_v46 }
 0x183   : > { %v1145_v63 = vadd.f32 %v1144_v51, %v1143_v62 }
 0x185   : > { %v1146_v19 = vrot.slane %v1145_v63, 1 }
 0x187   : > { %v1147_v0 = vadd.f32 %v1146_v19, %v1145_v63 }
 0x189   : > { %v1148_v45 = vadd.f32 %v1147_v0, %v1047_v58 }
 0x18b   : > { %v1149_v30 = vmul.f32 0.0625, %v1148_v45 }
 0x1c2   : > { %v890_v16 = vpop.xlane.xlu2 %889 }
 0x1c3   : > { %v918_v23 = vsub.f32 %v914_v56, %v890_v16 }
 0x1c5   : > { %v886_v52 = vpop.xlane.xlu1 %885 }
 0x1c6   : > { %v916_v2 = vsub.f32 %v912_v48, %v886_v52 }
 0x1c8   : > { %v919_v11 = vadd.f32 %v916_v2, %v915_v61 }
 0x1d1   : > { %v888_v14 = vpop.xlane.xlu0 %887 }
 0x1d2   : > { %v917_v17 = vsub.f32 %v913_v25, %v888_v14 }
 0x1d4   : > { %v920_v13 = vadd.f32 %v919_v11, %v917_v17 }
 0x1d6   : > { %v921_v27 = vadd.f32 %v920_v13, %v918_v23 }
 0x1d8   : > { %v922_v32 = vrot.slane %v921_v27, 4 }
 0x1da   : > { %v923_v26 = vadd.f32 %v922_v32, %v921_v27 }
 0x1dc   : > { %v924_v33 = vrot.slane %v923_v26, 2 }
 0x1de   : > { %v925_v60 = vadd.f32 %v924_v33, %v923_v26 }
 0x1e0   : > { %v926_v47 = vrot.slane %v925_v60, 1 }
 0x1e2   : > { %v927_v35 = vadd.f32 %v926_v47, %v925_v60 }
 0x1e4   : > { %v928_v24 = vmul.f32 0.015625, %v927_v35 }
 0x1e6   : > { %v1150_v20 = vadd.f32 %v1149_v30, %v928_v24 }
 0x1e8   : > { %1153 = vperm.xlu1 %1379, %v1150_v20  }
 0x25a   : > { %v1154_v46 = vpop.permute.xlu1 %1153 }
 0x25b   : > { %1156 = vst [vmem:[%s311_s10] sm:$0xff] %v1154_v46 }
 0x25c   : > { %1551 = shalt.err (!%p1548_p0)
}
 0x25d   : > { %1315 = dma.vmem_to_hbm [thread:$0]  (%p1695_p9), %s1171_s13, 128, %s1173_s6, %s1158_s14  }
 0x25e PF: > { %s1184_s28 = sand.u32 1, %s1586_s20   ;;  %p1322_p1 = pnand %p1293_p12, %p1702_p11 }
 0x25f   : > { %s1185_s26 = scalar_lea.sflag [#allocation9], %s1184_s28 }
 0x260   : > { %p1323_p2 = pneg %p1322_p1 }
 0x262   : > { %1581 = dma.done.wait (%p1323_p2), %s1185_s26, 128  }
 0x263   : > { %1583 = vsyncadd (%p1323_p2), %s1185_s26, 4294967168  ;;  %s23_s25 = sadd.s32 1, %s1606_s25   ;;  %s2213_s20 = smov %s1590_s21 }
 0x264   : > { %p20_p3 = scmp.ge.s32.totalorder %s23_s25, 4   ;;  %s2214_s21 = smov %s1594_s22 }
 0x265   : > { %s2215_s22 = smov %s1700_s8  ;;  %s2216_s23 = smov %s1602_s24 }
 0x266   : > { %s2217_s24 = smov %s2219_s27  ;;  %22 = sbr.rel (!%p20_p3) target bundleno = 9 (0x9), region = 102 }
 0x26b   :  { %1191 = vsyncpa [#allocation8], 1 }
 0x26c   :  { %1193 = vsyncpa [#allocation8 + $0x1], 1 }
 0x26d   :  { %1194 = vsyncpa [#allocation9], 1 }
 0x26e   :  { %1196 = vsyncpa [#allocation9 + $0x1], 1 }

</bundles_post_ra>
